<compile_context>
chip_gen: v7x
topology: tpu7x:2x2x1
jax: 0.10.0
libtpu: 0.0.40
codegen_flags: <defaults>
</compile_context>

<pallas_src>
import functools

import jax
import jax.numpy as jnp
from jax.experimental import pallas as pl
from jax.experimental.pallas import tpu as pltpu


DEFAULT_TILE_M = 256  # row tile; double-buffered activation tiles fit scoped VMEM


# ---------------------------- in-kernel helpers ----------------------------

def _layernorm(x, g, b, eps=1e-5):
    mu = jnp.mean(x, axis=-1, keepdims=True)
    var = jnp.mean(jnp.square(x - mu), axis=-1, keepdims=True)
    return (x - mu) * jax.lax.rsqrt(var + eps) * g + b


# ---------------------------- Pallas kernels ----------------------------

def _linear_kernel(x_ref, w_ref, b_ref, o_ref):
    y = jnp.dot(x_ref[...].astype(jnp.bfloat16), w_ref[...],
                preferred_element_type=jnp.float32)
    o_ref[...] = y + b_ref[...]


def _ln_qkv_kernel(x_ref, g_ref, b_ref, w_ref, o_ref):
    # Fused LayerNorm (f32) + bias-free matmul; bf16 output (intermediate only).
    xn = _layernorm(x_ref[...], g_ref[...], b_ref[...])
    y = jnp.dot(xn.astype(jnp.bfloat16), w_ref[...],
                preferred_element_type=jnp.float32)
    o_ref[...] = y.astype(jnp.bfloat16)


def _attn_head_kernel(q_ref, k_ref, v_ref, o_ref, *, n_valid, n_padded):
    # One (batch, head) pair per grid step. Scale is pre-folded into q weights.
    q = q_ref[0, 0]                                     # (Np, dh) bf16
    k = k_ref[0, 0]
    v = v_ref[0, 0]
    s = jax.lax.dot_general(q, k, (((1,), (1,)), ((), ())),
                            preferred_element_type=jnp.float32)   # (Np, Np)
    if n_valid < n_padded:                              # mask padded key tokens
        col = jax.lax.broadcasted_iota(jnp.int32, s.shape, 1)
        s = jnp.where(col < n_valid, s, -1e30)
    s = s - jnp.max(s, axis=-1, keepdims=True)
    p = jnp.exp(s)
    p = p * pl.reciprocal(jnp.sum(p, axis=-1, keepdims=True), approx=True)
    o = jnp.dot(p.astype(jnp.bfloat16), v, preferred_element_type=jnp.float32)
    o_ref[0, 0] = o.astype(jnp.bfloat16)


def _merge_mlp_kernel(attn_ref, wo_ref, bo_ref, x_ref, g2_ref, be2_ref,
                      w1_ref, b1_ref, w2_ref, b2_ref, o_ref):
    # Fused: x_mid = x + attn @ Wo + bo  (single K=inner out-projection)
    #        out   = x_mid + FF2(GELU(FF1(LN2(x_mid))))
    x_mid = (x_ref[...]
             + jnp.dot(attn_ref[...], wo_ref[...],
                       preferred_element_type=jnp.float32)
             + bo_ref[...])
    xn = _layernorm(x_mid, g2_ref[...], be2_ref[...])
    h = jnp.dot(xn.astype(jnp.bfloat16), w1_ref[...],
                preferred_element_type=jnp.float32)
    h = jax.nn.gelu(h + b1_ref[...], approximate=True)
    y = jnp.dot(h.astype(jnp.bfloat16), w2_ref[...],
                preferred_element_type=jnp.float32)
    o_ref[...] = x_mid + y + b2_ref[...]


def _ln_head_kernel(x_ref, g_ref, b_ref, w_ref, hb_ref, o_ref):
    xn = _layernorm(x_ref[...], g_ref[...], b_ref[...])
    o_ref[...] = (jnp.dot(xn.astype(jnp.bfloat16), w_ref[...],
                          preferred_element_type=jnp.float32) + hb_ref[...])


# ---------------------------- kernel wrappers ----------------------------

def _row_plan(M, cap=DEFAULT_TILE_M):
    """Pick a row tile. Prefer a divisor of M (no pad/slice HBM round trips)."""
    if M <= cap:
        return M, M
    t = cap - cap % 8
    while t >= 8:
        if M % t == 0:
            return t, M
        t -= 8
    Mp = ((M + cap - 1) // cap) * cap    # rare fallback (M not a multiple of 8)
    return cap, Mp


def _maybe_pad_rows(x, Mp):
    M = x.shape[0]
    return x if Mp == M else jnp.pad(x, ((0, Mp - M), (0, 0)))


def _maybe_trim_rows(x, M):
    return x if x.shape[0] == M else x[:M]


def _inv(shape):
    """Grid-invariant operand: single-buffered to save VMEM (v5e 16 MiB scoped
    default, v7x 64 MiB physical)."""
    return pl.BlockSpec(shape, lambda i: (0,) * len(shape),
                        pipeline_mode=pl.Buffered(1))


_ROW = ("parallel",)


def pallas_linear(x, w, b, *, tile_m=DEFAULT_TILE_M):
    """x: (M, K) f32, w: (K, N) bf16, b: (N,) f32 -> (M, N) f32."""
    M, K = x.shape
    N = w.shape[1]
    tm, Mp = _row_plan(M, tile_m)
    out = pl.pallas_call(
        _linear_kernel,
        out_shape=jax.ShapeDtypeStruct((Mp, N), jnp.float32),
        grid=(Mp // tm,),
        in_specs=[pl.BlockSpec((tm, K), lambda i: (i, 0)),
                  _inv((K, N)),
                  _inv((1, N))],
        out_specs=pl.BlockSpec((tm, N), lambda i: (i, 0)),
        compiler_params=pltpu.CompilerParams(dimension_semantics=_ROW),
        cost_estimate=pl.CostEstimate(
            flops=2 * M * K * N, transcendentals=0,
            bytes_accessed=M * K * 4 + K * N * 2 + N * 4 + M * N * 4),
    )(_maybe_pad_rows(x, Mp), w, b.reshape(1, N))
    return _maybe_trim_rows(out, M)


def pallas_ln_qkv(x, g, b, w, *, tile_m=DEFAULT_TILE_M):
    """Fused LayerNorm + bias-free QKV projection. Output is bf16."""
    M, D = x.shape
    N = w.shape[1]
    tm, Mp = _row_plan(M, tile_m)
    out = pl.pallas_call(
        _ln_qkv_kernel,
        out_shape=jax.ShapeDtypeStruct((Mp, N), jnp.bfloat16),
        grid=(Mp // tm,),
        in_specs=[pl.BlockSpec((tm, D), lambda i: (i, 0)),
                  _inv((1, D)), _inv((1, D)), _inv((D, N))],
        out_specs=pl.BlockSpec((tm, N), lambda i: (i, 0)),
        compiler_params=pltpu.CompilerParams(dimension_semantics=_ROW),
        cost_estimate=pl.CostEstimate(
            flops=2 * M * D * N, transcendentals=2 * M,
            bytes_accessed=M * D * 4 + D * N * 2 + 2 * D * 4 + M * N * 2),
    )(_maybe_pad_rows(x, Mp), g.reshape(1, D), b.reshape(1, D), w)
    return _maybe_trim_rows(out, M)


def pallas_attention_heads(q, k, v, *, n_valid):
    """q/k/v: (B, heads, Np, dh) bf16 -> per-head attention output, same shape,
    bf16. Gridded over (batch, heads); padded key tokens are masked."""
    B, H, Np, Dh = q.shape
    kern = functools.partial(_attn_head_kernel, n_valid=n_valid, n_padded=Np)
    spec = pl.BlockSpec((1, 1, Np, Dh), lambda b, h: (b, h, 0, 0))
    return pl.pallas_call(
        kern,
        out_shape=jax.ShapeDtypeStruct((B, H, Np, Dh), jnp.bfloat16),
        grid=(B, H),
        in_specs=[spec, spec, spec],
        out_specs=spec,
        compiler_params=pltpu.CompilerParams(
            dimension_semantics=("parallel", "parallel")),
        cost_estimate=pl.CostEstimate(
            flops=4 * B * H * Np * Np * Dh,
            transcendentals=B * H * Np * Np,
            bytes_accessed=4 * B * H * Np * Dh * 2),
    )(q, k, v)


def pallas_attn_merge_mlp(attn, wo, bo, x, g2, be2, w1, b1, w2, b2,
                          *, tile_m=DEFAULT_TILE_M):
    """Fused: x_mid = x + attn @ Wo + bo ; out = x_mid + FF2(GELU(FF1(LN2(x_mid))))."""
    M, D = x.shape
    inner = attn.shape[1]
    Hd = w1.shape[1]
    tm, Mp = _row_plan(M, tile_m)
    out = pl.pallas_call(
        _merge_mlp_kernel,
        out_shape=jax.ShapeDtypeStruct((Mp, D), jnp.float32),
        grid=(Mp // tm,),
        in_specs=[pl.BlockSpec((tm, inner), lambda i: (i, 0)),
                  _inv((inner, D)), _inv((1, D)),
                  pl.BlockSpec((tm, D), lambda i: (i, 0)),
                  _inv((1, D)), _inv((1, D)),
                  _inv((D, Hd)), _inv((1, Hd)),
                  _inv((Hd, D)), _inv((1, D))],
        out_specs=pl.BlockSpec((tm, D), lambda i: (i, 0)),
        compiler_params=pltpu.CompilerParams(dimension_semantics=_ROW),
        cost_estimate=pl.CostEstimate(
            flops=2 * M * inner * D + 4 * M * D * Hd,
            transcendentals=M * Hd + 2 * M,
            bytes_accessed=(M * inner * 2 + 2 * M * D * 4
                            + (inner * D + 2 * D * Hd) * 2
                            + (3 * D + Hd) * 4)),
    )(_maybe_pad_rows(attn, Mp), wo, bo.reshape(1, D),
      _maybe_pad_rows(x, Mp), g2.reshape(1, D), be2.reshape(1, D),
      w1, b1.reshape(1, Hd), w2, b2.reshape(1, D))
    return _maybe_trim_rows(out, M)


def pallas_ln_head(x, g, b, w, hb, *, tile_m=DEFAULT_TILE_M):
    """Fused final LayerNorm + classifier head."""
    M, D = x.shape
    C = w.shape[1]
    tm, Mp = _row_plan(M, tile_m)
    out = pl.pallas_call(
        _ln_head_kernel,
        out_shape=jax.ShapeDtypeStruct((Mp, C), jnp.float32),
        grid=(Mp // tm,),
        in_specs=[pl.BlockSpec((tm, D), lambda i: (i, 0)),
                  _inv((1, D)), _inv((1, D)), _inv((D, C)), _inv((1, C))],
        out_specs=pl.BlockSpec((tm, C), lambda i: (i, 0)),
        compiler_params=pltpu.CompilerParams(dimension_semantics=_ROW),
    )(_maybe_pad_rows(x, Mp), g.reshape(1, D), b.reshape(1, D), w,
      hb.reshape(1, C))
    return _maybe_trim_rows(out, M)


# ---------------------------- parameters ----------------------------

def init_params(key, *, image_size, patch_size, channels, dim, depth, heads,
                dim_head, mlp_dim, num_classes):
    patch_dim = channels * patch_size * patch_size
    num_patches = (image_size // patch_size) ** 2
    inner_dim = heads * dim_head
    scale = dim_head ** -0.5
    keys = iter(jax.random.split(key, 8 + 8 * depth))

    def nrm_f32(shape, s=0.02):
        return jax.random.normal(next(keys), shape, jnp.float32) * s

    def nrm(shape, s=0.02):
        return nrm_f32(shape, s).astype(jnp.bfloat16)

    params = dict(
        patch_w=nrm((patch_dim, dim)),
        patch_b=jnp.zeros((dim,), jnp.float32),
        cls_token=jax.random.normal(next(keys), (1, 1, dim), jnp.float32),
        pos_embedding=jax.random.normal(next(keys), (1, num_patches + 1, dim),
                                        jnp.float32),
        layers=[],
        final_ln_g=jnp.ones((dim,), jnp.float32),
        final_ln_b=jnp.zeros((dim,), jnp.float32),
        head_w=nrm((dim, num_classes)),
        head_b=jnp.zeros((num_classes,), jnp.float32),
    )
    for _ in range(depth):
        qkv_w = nrm_f32((dim, 3 * inner_dim))
        # Fold the softmax scale into the q-columns (frees a VPU multiply/head).
        qkv_w = qkv_w.at[:, :inner_dim].multiply(scale)
        params["layers"].append(dict(
            ln1_g=jnp.ones((dim,), jnp.float32),
            ln1_b=jnp.zeros((dim,), jnp.float32),
            qkv_w=qkv_w.astype(jnp.bfloat16),            # to_qkv, bias=False
            out_w=nrm((inner_dim, dim)),                 # flat (inner, dim)
            out_b=jnp.zeros((dim,), jnp.float32),
            ln2_g=jnp.ones((dim,), jnp.float32),
            ln2_b=jnp.zeros((dim,), jnp.float32),
            ff1_w=nrm((dim, mlp_dim)),
            ff1_b=jnp.zeros((mlp_dim,), jnp.float32),
            ff2_w=nrm((mlp_dim, dim)),
            ff2_b=jnp.zeros((dim,), jnp.float32),
        ))
    return params


# ---------------------------- forward pass ----------------------------

def vit_forward(params, img, *, patch_size, heads, dim_head, pool="cls"):
    B, C, H, W = img.shape
    p = patch_size
    hh, ww = H // p, W // p
    n = hh * ww
    dim = params["patch_w"].shape[1]
    inner = heads * dim_head

    # Patch embedding: 'b c (h p1) (w p2) -> b (h w) (p1 p2 c)' + Linear.
    x = img.reshape(B, C, hh, p, ww, p).transpose(0, 2, 4, 3, 5, 1)
    x = x.reshape(B * n, p * p * C)
    x = pallas_linear(x, params["patch_w"], params["patch_b"]).reshape(B, n, dim)

    # cls token + positional embedding (emb_dropout = 0 -> identity).
    cls = jnp.broadcast_to(params["cls_token"], (B, 1, dim))
    x = jnp.concatenate([cls, x], axis=1)
    x = x + params["pos_embedding"][:, : n + 1]
    Nt = n + 1

    # Pad the token dim ONCE (multiple of 8); padded keys are masked inside the
    # attention kernel, padded rows are dead weight elsewhere and never read.
    Np = ((Nt + 7) // 8) * 8
    if Np != Nt:
        x = jnp.pad(x, ((0, 0), (0, Np - Nt), (0, 0)))
    M = B * Np

    for layer in params["layers"]:
        # LN1 + QKV projection (bf16 intermediate).
        qkv = pallas_ln_qkv(x.reshape(M, dim), layer["ln1_g"], layer["ln1_b"],
                            layer["qkv_w"])
        # Head split in the wrapper (bf16, one transpose) -> contiguous per-head
        # blocks for the attention kernel (no unaligned lane slices in-kernel).
        qkv = qkv.reshape(B, Np, 3, heads, dim_head).transpose(2, 0, 3, 1, 4)
        attn = pallas_attention_heads(qkv[0], qkv[1], qkv[2], n_valid=Nt)
        attn = attn.transpose(0, 2, 1, 3).reshape(M, inner)        # bf16

        # Fused: out-projection (K=inner) + residual + LN2 + MLP + residual.
        x = pallas_attn_merge_mlp(
            attn, layer["out_w"], layer["out_b"], x.reshape(M, dim),
            layer["ln2_g"], layer["ln2_b"],
            layer["ff1_w"], layer["ff1_b"],
            layer["ff2_w"], layer["ff2_b"]).reshape(B, Np, dim)

    # Pool BEFORE the fused final-LN + head ('cls' commutes with per-token LN;
    # for 'mean' the affine head commutes with the mean over tokens).
    if pool == "cls":
        return pallas_ln_head(x[:, 0], params["final_ln_g"],
                              params["final_ln_b"], params["head_w"],
                              params["head_b"])
    logits = pallas_ln_head(x[:, :Nt].reshape(B * Nt, dim),
                            params["final_ln_g"], params["final_ln_b"],
                            params["head_w"], params["head_b"])
    return logits.reshape(B, Nt, -1).mean(axis=1)


# ---------------------------- main ----------------------------

if __name__ == "__main__":
    cfg = dict(image_size=16, patch_size=4, channels=4, dim=32, depth=2,
               heads=4, dim_head=8, mlp_dim=64, num_classes=10)

    key = jax.random.PRNGKey(0)
    k_params, k_img = jax.random.split(key)
    params = init_params(k_params, **cfg)

    img = jax.random.normal(
        k_img, (2, cfg["channels"], cfg["image_size"], cfg["image_size"]),
        jnp.float32)  # NCHW, matching PyTorch

    fwd = jax.jit(functools.partial(vit_forward,
                                    patch_size=cfg["patch_size"],
                                    heads=cfg["heads"],
                                    dim_head=cfg["dim_head"],
                                    pool="cls"))
    logits = jax.block_until_ready(fwd(params, img))
    assert logits.shape == (2, cfg["num_classes"])
    assert bool(jnp.all(jnp.isfinite(logits)))
    print("KERNEL_OK")
</pallas_src>

<mosaic_0001>
module attributes {stable_mosaic.version = 11 : i64} {
  func.func @_linear_kernel(%arg0: i32, %arg1: memref<32x64xf32, #tpu.memory_space<vmem>>, %arg2: memref<64x32xbf16, #tpu.memory_space<vmem>>, %arg3: memref<1x32xf32, #tpu.memory_space<vmem>>, %arg4: memref<32x32xf32, #tpu.memory_space<vmem>>) attributes {dimension_semantics = [#tpu.dimension_semantics<parallel>], iteration_bounds = array<i64: 1>, scalar_prefetch = 0 : i64, scratch_operands = 0 : i64, tpu.core_type = #tpu.core_type<tc>, window_params = [{transform_indices = @transform_0, window_bounds = array<i64: 32, 64>}, {pipeline_mode = #tpu.pipeline_mode<synchronous>, transform_indices = @transform_1, window_bounds = array<i64: 64, 32>}, {pipeline_mode = #tpu.pipeline_mode<synchronous>, transform_indices = @transform_2, window_bounds = array<i64: 1, 32>}, {transform_indices = @transform_3, window_bounds = array<i64: 32, 32>}]} {
    %c0 = arith.constant 0 : index
    %c0_0 = arith.constant 0 : index
    %0 = vector.load %arg1[%c0, %c0_0] : memref<32x64xf32, #tpu.memory_space<vmem>>, vector<32x64xf32>
    %1 = arith.truncf %0 : vector<32x64xf32> to vector<32x64xbf16>
    %c0_1 = arith.constant 0 : index
    %c0_2 = arith.constant 0 : index
    %2 = vector.load %arg2[%c0_1, %c0_2] : memref<64x32xbf16, #tpu.memory_space<vmem>>, vector<64x32xbf16>
    %cst = arith.constant dense<0.000000e+00> : vector<32x32xf32>
    %3 = tpu.matmul %1, %2, %cst {dimension_numbers = #tpu.dot_dimension_numbers<[1], [0], [0], [1], [0, 0, 1, 1], [], []>} : vector<32x64xbf16>, vector<64x32xbf16>, vector<32x32xf32> -> vector<32x32xf32>
    %c0_3 = arith.constant 0 : index
    %c0_4 = arith.constant 0 : index
    %4 = vector.load %arg3[%c0_3, %c0_4] : memref<1x32xf32, #tpu.memory_space<vmem>>, vector<1x32xf32>
    %5 = vector.broadcast %4 : vector<1x32xf32> to vector<32x32xf32>
    %6 = arith.addf %3, %5 : vector<32x32xf32>
    %c0_5 = arith.constant 0 : index
    %c0_6 = arith.constant 0 : index
    %7 = vector.load %arg4[%c0_5, %c0_6] : memref<32x32xf32, #tpu.memory_space<vmem>>, vector<32x32xf32>
    tpu.vector_store %arg4[%c0_5, %c0_6], %6 {strides = array<i32>} : memref<32x32xf32, #tpu.memory_space<vmem>>, vector<32x32xf32>,
    return
  }
  func.func @transform_0(%arg0: i32) -> (i32, i32) {
    %c0_i32 = arith.constant 0 : i32
    %c0_i32_0 = arith.constant 0 : i32
    return %arg0, %c0_i32 : i32, i32
  }
  func.func @transform_1(%arg0: i32) -> (i32, i32) {
    %c0_i32 = arith.constant 0 : i32
    %c0_i32_0 = arith.constant 0 : i32
    %c0_i32_1 = arith.constant 0 : i32
    return %c0_i32, %c0_i32_0 : i32, i32
  }
  func.func @transform_2(%arg0: i32) -> (i32, i32) {
    %c0_i32 = arith.constant 0 : i32
    %c0_i32_0 = arith.constant 0 : i32
    %c0_i32_1 = arith.constant 0 : i32
    return %c0_i32, %c0_i32_0 : i32, i32
  }
  func.func @transform_3(%arg0: i32) -> (i32, i32) {
    %c0_i32 = arith.constant 0 : i32
    %c0_i32_0 = arith.constant 0 : i32
    return %arg0, %c0_i32 : i32, i32
  }
}

module attributes {stable_mosaic.version = 11 : i64} {
  func.func @_ln_qkv_kernel(%arg0: i32, %arg1: memref<48x32xf32, #tpu.memory_space<vmem>>, %arg2: memref<1x32xf32, #tpu.memory_space<vmem>>, %arg3: memref<1x32xf32, #tpu.memory_space<vmem>>, %arg4: memref<32x96xbf16, #tpu.memory_space<vmem>>, %arg5: memref<48x96xbf16, #tpu.memory_space<vmem>>) attributes {dimension_semantics = [#tpu.dimension_semantics<parallel>], iteration_bounds = array<i64: 1>, scalar_prefetch = 0 : i64, scratch_operands = 0 : i64, tpu.core_type = #tpu.core_type<tc>, window_params = [{transform_indices = @transform_0, window_bounds = array<i64: 48, 32>}, {pipeline_mode = #tpu.pipeline_mode<synchronous>, transform_indices = @transform_1, window_bounds = array<i64: 1, 32>}, {pipeline_mode = #tpu.pipeline_mode<synchronous>, transform_indices = @transform_2, window_bounds = array<i64: 1, 32>}, {pipeline_mode = #tpu.pipeline_mode<synchronous>, transform_indices = @transform_3, window_bounds = array<i64: 32, 96>}, {transform_indices = @transform_4, window_bounds = array<i64: 48, 96>}]} {
    %c0 = arith.constant 0 : index
    %c0_0 = arith.constant 0 : index
    %0 = vector.load %arg1[%c0, %c0_0] : memref<48x32xf32, #tpu.memory_space<vmem>>, vector<48x32xf32>
    %c0_1 = arith.constant 0 : index
    %c0_2 = arith.constant 0 : index
    %1 = vector.load %arg2[%c0_1, %c0_2] : memref<1x32xf32, #tpu.memory_space<vmem>>, vector<1x32xf32>
    %c0_3 = arith.constant 0 : index
    %c0_4 = arith.constant 0 : index
    %2 = vector.load %arg3[%c0_3, %c0_4] : memref<1x32xf32, #tpu.memory_space<vmem>>, vector<1x32xf32>
    %cst = arith.constant dense<0.000000e+00> : vector<48xf32>
    %3 = vector.multi_reduction <add>, %0, %cst [1] : vector<48x32xf32> to vector<48xf32>
    %4 = vector.shape_cast %3 : vector<48xf32> to vector<48x1xf32>
    %cst_5 = arith.constant 3.200000e+01 : f32
    %5 = vector.broadcast %cst_5 : f32 to vector<48x1xf32>
    %6 = arith.divf %4, %5 : vector<48x1xf32>
    %7 = vector.broadcast %6 : vector<48x1xf32> to vector<48x32xf32>
    %8 = arith.subf %0, %7 : vector<48x32xf32>
    %9 = arith.mulf %8, %8 : vector<48x32xf32>
    %cst_6 = arith.constant dense<0.000000e+00> : vector<48xf32>
    %10 = vector.multi_reduction <add>, %9, %cst_6 [1] : vector<48x32xf32> to vector<48xf32>
    %11 = vector.shape_cast %10 : vector<48xf32> to vector<48x1xf32>
    %cst_7 = arith.constant 3.200000e+01 : f32
    %12 = vector.broadcast %cst_7 : f32 to vector<48x1xf32>
    %13 = arith.divf %11, %12 : vector<48x1xf32>
    %14 = vector.broadcast %6 : vector<48x1xf32> to vector<48x32xf32>
    %15 = arith.subf %0, %14 : vector<48x32xf32>
    %cst_8 = arith.constant 9.99999974E-6 : f32
    %16 = vector.broadcast %cst_8 : f32 to vector<48x1xf32>
    %17 = arith.addf %13, %16 : vector<48x1xf32>
    %18 = math.rsqrt %17 : vector<48x1xf32>
    %19 = vector.broadcast %18 : vector<48x1xf32> to vector<48x32xf32>
    %20 = arith.mulf %15, %19 : vector<48x32xf32>
    %21 = vector.broadcast %1 : vector<1x32xf32> to vector<48x32xf32>
    %22 = arith.mulf %20, %21 : vector<48x32xf32>
    %23 = vector.broadcast %2 : vector<1x32xf32> to vector<48x32xf32>
    %24 = arith.addf %22, %23 : vector<48x32xf32>
    %25 = arith.truncf %24 : vector<48x32xf32> to vector<48x32xbf16>
    %c0_9 = arith.constant 0 : index
    %c0_10 = arith.constant 0 : index
    %26 = vector.load %arg4[%c0_9, %c0_10] : memref<32x96xbf16, #tpu.memory_space<vmem>>, vector<32x96xbf16>
    %cst_11 = arith.constant dense<0.000000e+00> : vector<48x96xf32>
    %27 = tpu.matmul %25, %26, %cst_11 {dimension_numbers = #tpu.dot_dimension_numbers<[1], [0], [0], [1], [0, 0, 1, 1], [], []>} : vector<48x32xbf16>, vector<32x96xbf16>, vector<48x96xf32> -> vector<48x96xf32>
    %28 = arith.truncf %27 : vector<48x96xf32> to vector<48x96xbf16>
    %c0_12 = arith.constant 0 : index
    %c0_13 = arith.constant 0 : index
    %29 = vector.load %arg5[%c0_12, %c0_13] : memref<48x96xbf16, #tpu.memory_space<vmem>>, vector<48x96xbf16>
    tpu.vector_store %arg5[%c0_12, %c0_13], %28 {strides = array<i32>} : memref<48x96xbf16, #tpu.memory_space<vmem>>, vector<48x96xbf16>,
    return
  }
  func.func @transform_0(%arg0: i32) -> (i32, i32) {
    %c0_i32 = arith.constant 0 : i32
    %c0_i32_0 = arith.constant 0 : i32
    return %arg0, %c0_i32 : i32, i32
  }
  func.func @transform_1(%arg0: i32) -> (i32, i32) {
    %c0_i32 = arith.constant 0 : i32
    %c0_i32_0 = arith.constant 0 : i32
    %c0_i32_1 = arith.constant 0 : i32
    return %c0_i32, %c0_i32_0 : i32, i32
  }
  func.func @transform_2(%arg0: i32) -> (i32, i32) {
    %c0_i32 = arith.constant 0 : i32
    %c0_i32_0 = arith.constant 0 : i32
    %c0_i32_1 = arith.constant 0 : i32
    return %c0_i32, %c0_i32_0 : i32, i32
  }
  func.func @transform_3(%arg0: i32) -> (i32, i32) {
    %c0_i32 = arith.constant 0 : i32
    %c0_i32_0 = arith.constant 0 : i32
    %c0_i32_1 = arith.constant 0 : i32
    return %c0_i32, %c0_i32_0 : i32, i32
  }
  func.func @transform_4(%arg0: i32) -> (i32, i32) {
    %c0_i32 = arith.constant 0 : i32
    %c0_i32_0 = arith.constant 0 : i32
    return %arg0, %c0_i32 : i32, i32
  }
}

module attributes {stable_mosaic.version = 11 : i64} {
  func.func @_merge_mlp_kernel(%arg0: i32, %arg1: memref<48x32xbf16, #tpu.memory_space<vmem>>, %arg2: memref<32x32xbf16, #tpu.memory_space<vmem>>, %arg3: memref<1x32xf32, #tpu.memory_space<vmem>>, %arg4: memref<48x32xf32, #tpu.memory_space<vmem>>, %arg5: memref<1x32xf32, #tpu.memory_space<vmem>>, %arg6: memref<1x32xf32, #tpu.memory_space<vmem>>, %arg7: memref<32x64xbf16, #tpu.memory_space<vmem>>, %arg8: memref<1x64xf32, #tpu.memory_space<vmem>>, %arg9: memref<64x32xbf16, #tpu.memory_space<vmem>>, %arg10: memref<1x32xf32, #tpu.memory_space<vmem>>, %arg11: memref<48x32xf32, #tpu.memory_space<vmem>>) attributes {dimension_semantics = [#tpu.dimension_semantics<parallel>], iteration_bounds = array<i64: 1>, scalar_prefetch = 0 : i64, scratch_operands = 0 : i64, tpu.core_type = #tpu.core_type<tc>, window_params = [{transform_indices = @transform_0, window_bounds = array<i64: 48, 32>}, {pipeline_mode = #tpu.pipeline_mode<synchronous>, transform_indices = @transform_1, window_bounds = array<i64: 32, 32>}, {pipeline_mode = #tpu.pipeline_mode<synchronous>, transform_indices = @transform_2, window_bounds = array<i64: 1, 32>}, {transform_indices = @transform_3, window_bounds = array<i64: 48, 32>}, {pipeline_mode = #tpu.pipeline_mode<synchronous>, transform_indices = @transform_4, window_bounds = array<i64: 1, 32>}, {pipeline_mode = #tpu.pipeline_mode<synchronous>, transform_indices = @transform_5, window_bounds = array<i64: 1, 32>}, {pipeline_mode = #tpu.pipeline_mode<synchronous>, transform_indices = @transform_6, window_bounds = array<i64: 32, 64>}, {pipeline_mode = #tpu.pipeline_mode<synchronous>, transform_indices = @transform_7, window_bounds = array<i64: 1, 64>}, {pipeline_mode = #tpu.pipeline_mode<synchronous>, transform_indices = @transform_8, window_bounds = array<i64: 64, 32>}, {pipeline_mode = #tpu.pipeline_mode<synchronous>, transform_indices = @transform_9, window_bounds = array<i64: 1, 32>}, {transform_indices = @transform_10, window_bounds = array<i64: 48, 32>}]} {
    %c0 = arith.constant 0 : index
    %c0_0 = arith.constant 0 : index
    %0 = vector.load %arg4[%c0, %c0_0] : memref<48x32xf32, #tpu.memory_space<vmem>>, vector<48x32xf32>
    %c0_1 = arith.constant 0 : index
    %c0_2 = arith.constant 0 : index
    %1 = vector.load %arg1[%c0_1, %c0_2] : memref<48x32xbf16, #tpu.memory_space<vmem>>, vector<48x32xbf16>
    %c0_3 = arith.constant 0 : index
    %c0_4 = arith.constant 0 : index
    %2 = vector.load %arg2[%c0_3, %c0_4] : memref<32x32xbf16, #tpu.memory_space<vmem>>, vector<32x32xbf16>
    %cst = arith.constant dense<0.000000e+00> : vector<48x32xf32>
    %3 = tpu.matmul %1, %2, %cst {dimension_numbers = #tpu.dot_dimension_numbers<[1], [0], [0], [1], [0, 0, 1, 1], [], []>} : vector<48x32xbf16>, vector<32x32xbf16>, vector<48x32xf32> -> vector<48x32xf32>
    %4 = arith.addf %0, %3 : vector<48x32xf32>
    %c0_5 = arith.constant 0 : index
    %c0_6 = arith.constant 0 : index
    %5 = vector.load %arg3[%c0_5, %c0_6] : memref<1x32xf32, #tpu.memory_space<vmem>>, vector<1x32xf32>
    %6 = vector.broadcast %5 : vector<1x32xf32> to vector<48x32xf32>
    %7 = arith.addf %4, %6 : vector<48x32xf32>
    %c0_7 = arith.constant 0 : index
    %c0_8 = arith.constant 0 : index
    %8 = vector.load %arg5[%c0_7, %c0_8] : memref<1x32xf32, #tpu.memory_space<vmem>>, vector<1x32xf32>
    %c0_9 = arith.constant 0 : index
    %c0_10 = arith.constant 0 : index
    %9 = vector.load %arg6[%c0_9, %c0_10] : memref<1x32xf32, #tpu.memory_space<vmem>>, vector<1x32xf32>
    %cst_11 = arith.constant dense<0.000000e+00> : vector<48xf32>
    %10 = vector.multi_reduction <add>, %7, %cst_11 [1] : vector<48x32xf32> to vector<48xf32>
    %11 = vector.shape_cast %10 : vector<48xf32> to vector<48x1xf32>
    %cst_12 = arith.constant 3.200000e+01 : f32
    %12 = vector.broadcast %cst_12 : f32 to vector<48x1xf32>
    %13 = arith.divf %11, %12 : vector<48x1xf32>
    %14 = vector.broadcast %13 : vector<48x1xf32> to vector<48x32xf32>
    %15 = arith.subf %7, %14 : vector<48x32xf32>
    %16 = arith.mulf %15, %15 : vector<48x32xf32>
    %cst_13 = arith.constant dense<0.000000e+00> : vector<48xf32>
    %17 = vector.multi_reduction <add>, %16, %cst_13 [1] : vector<48x32xf32> to vector<48xf32>
    %18 = vector.shape_cast %17 : vector<48xf32> to vector<48x1xf32>
    %cst_14 = arith.constant 3.200000e+01 : f32
    %19 = vector.broadcast %cst_14 : f32 to vector<48x1xf32>
    %20 = arith.divf %18, %19 : vector<48x1xf32>
    %21 = vector.broadcast %13 : vector<48x1xf32> to vector<48x32xf32>
    %22 = arith.subf %7, %21 : vector<48x32xf32>
    %cst_15 = arith.constant 9.99999974E-6 : f32
    %23 = vector.broadcast %cst_15 : f32 to vector<48x1xf32>
    %24 = arith.addf %20, %23 : vector<48x1xf32>
    %25 = math.rsqrt %24 : vector<48x1xf32>
    %26 = vector.broadcast %25 : vector<48x1xf32> to vector<48x32xf32>
    %27 = arith.mulf %22, %26 : vector<48x32xf32>
    %28 = vector.broadcast %8 : vector<1x32xf32> to vector<48x32xf32>
    %29 = arith.mulf %27, %28 : vector<48x32xf32>
    %30 = vector.broadcast %9 : vector<1x32xf32> to vector<48x32xf32>
    %31 = arith.addf %29, %30 : vector<48x32xf32>
    %32 = arith.truncf %31 : vector<48x32xf32> to vector<48x32xbf16>
    %c0_16 = arith.constant 0 : index
    %c0_17 = arith.constant 0 : index
    %33 = vector.load %arg7[%c0_16, %c0_17] : memref<32x64xbf16, #tpu.memory_space<vmem>>, vector<32x64xbf16>
    %cst_18 = arith.constant dense<0.000000e+00> : vector<48x64xf32>
    %34 = tpu.matmul %32, %33, %cst_18 {dimension_numbers = #tpu.dot_dimension_numbers<[1], [0], [0], [1], [0, 0, 1, 1], [], []>} : vector<48x32xbf16>, vector<32x64xbf16>, vector<48x64xf32> -> vector<48x64xf32>
    %c0_19 = arith.constant 0 : index
    %c0_20 = arith.constant 0 : index
    %35 = vector.load %arg8[%c0_19, %c0_20] : memref<1x64xf32, #tpu.memory_space<vmem>>, vector<1x64xf32>
    %36 = vector.broadcast %35 : vector<1x64xf32> to vector<48x64xf32>
    %37 = arith.addf %34, %36 : vector<48x64xf32>
    %38 = arith.mulf %37, %37 : vector<48x64xf32>
    %39 = arith.mulf %37, %38 : vector<48x64xf32>
    %cst_21 = arith.constant 4.471500e-02 : f32
    %40 = vector.broadcast %cst_21 : f32 to vector<48x64xf32>
    %41 = arith.mulf %40, %39 : vector<48x64xf32>
    %42 = arith.addf %37, %41 : vector<48x64xf32>
    %cst_22 = arith.constant 0.797884583 : f32
    %43 = vector.broadcast %cst_22 : f32 to vector<48x64xf32>
    %44 = arith.mulf %43, %42 : vector<48x64xf32>
    %45 = math.tanh %44 : vector<48x64xf32>
    %cst_23 = arith.constant 1.000000e+00 : f32
    %46 = vector.broadcast %cst_23 : f32 to vector<48x64xf32>
    %47 = arith.addf %46, %45 : vector<48x64xf32>
    %cst_24 = arith.constant 5.000000e-01 : f32
    %48 = vector.broadcast %cst_24 : f32 to vector<48x64xf32>
    %49 = arith.mulf %48, %47 : vector<48x64xf32>
    %50 = arith.mulf %37, %49 : vector<48x64xf32>
    %51 = arith.truncf %50 : vector<48x64xf32> to vector<48x64xbf16>
    %c0_25 = arith.constant 0 : index
    %c0_26 = arith.constant 0 : index
    %52 = vector.load %arg9[%c0_25, %c0_26] : memref<64x32xbf16, #tpu.memory_space<vmem>>, vector<64x32xbf16>
    %cst_27 = arith.constant dense<0.000000e+00> : vector<48x32xf32>
    %53 = tpu.matmul %51, %52, %cst_27 {dimension_numbers = #tpu.dot_dimension_numbers<[1], [0], [0], [1], [0, 0, 1, 1], [], []>} : vector<48x64xbf16>, vector<64x32xbf16>, vector<48x32xf32> -> vector<48x32xf32>
    %54 = arith.addf %7, %53 : vector<48x32xf32>
    %c0_28 = arith.constant 0 : index
    %c0_29 = arith.constant 0 : index
    %55 = vector.load %arg10[%c0_28, %c0_29] : memref<1x32xf32, #tpu.memory_space<vmem>>, vector<1x32xf32>
    %56 = vector.broadcast %55 : vector<1x32xf32> to vector<48x32xf32>
    %57 = arith.addf %54, %56 : vector<48x32xf32>
    %c0_30 = arith.constant 0 : index
    %c0_31 = arith.constant 0 : index
    %58 = vector.load %arg11[%c0_30, %c0_31] : memref<48x32xf32, #tpu.memory_space<vmem>>, vector<48x32xf32>
    tpu.vector_store %arg11[%c0_30, %c0_31], %57 {strides = array<i32>} : memref<48x32xf32, #tpu.memory_space<vmem>>, vector<48x32xf32>,
    return
  }
  func.func @transform_0(%arg0: i32) -> (i32, i32) {
    %c0_i32 = arith.constant 0 : i32
    %c0_i32_0 = arith.constant 0 : i32
    return %arg0, %c0_i32 : i32, i32
  }
  func.func @transform_1(%arg0: i32) -> (i32, i32) {
    %c0_i32 = arith.constant 0 : i32
    %c0_i32_0 = arith.constant 0 : i32
    %c0_i32_1 = arith.constant 0 : i32
    return %c0_i32, %c0_i32_0 : i32, i32
  }
  func.func @transform_2(%arg0: i32) -> (i32, i32) {
    %c0_i32 = arith.constant 0 : i32
    %c0_i32_0 = arith.constant 0 : i32
    %c0_i32_1 = arith.constant 0 : i32
    return %c0_i32, %c0_i32_0 : i32, i32
  }
  func.func @transform_3(%arg0: i32) -> (i32, i32) {
    %c0_i32 = arith.constant 0 : i32
    %c0_i32_0 = arith.constant 0 : i32
    return %arg0, %c0_i32 : i32, i32
  }
  func.func @transform_4(%arg0: i32) -> (i32, i32) {
    %c0_i32 = arith.constant 0 : i32
    %c0_i32_0 = arith.constant 0 : i32
    %c0_i32_1 = arith.constant 0 : i32
    return %c0_i32, %c0_i32_0 : i32, i32
  }
  func.func @transform_5(%arg0: i32) -> (i32, i32) {
    %c0_i32 = arith.constant 0 : i32
    %c0_i32_0 = arith.constant 0 : i32
    %c0_i32_1 = arith.constant 0 : i32
    return %c0_i32, %c0_i32_0 : i32, i32
  }
  func.func @transform_6(%arg0: i32) -> (i32, i32) {
    %c0_i32 = arith.constant 0 : i32
    %c0_i32_0 = arith.constant 0 : i32
    %c0_i32_1 = arith.constant 0 : i32
    return %c0_i32, %c0_i32_0 : i32, i32
  }
  func.func @transform_7(%arg0: i32) -> (i32, i32) {
    %c0_i32 = arith.constant 0 : i32
    %c0_i32_0 = arith.constant 0 : i32
    %c0_i32_1 = arith.constant 0 : i32
    return %c0_i32, %c0_i32_0 : i32, i32
  }
  func.func @transform_8(%arg0: i32) -> (i32, i32) {
    %c0_i32 = arith.constant 0 : i32
    %c0_i32_0 = arith.constant 0 : i32
    %c0_i32_1 = arith.constant 0 : i32
    return %c0_i32, %c0_i32_0 : i32, i32
  }
  func.func @transform_9(%arg0: i32) -> (i32, i32) {
    %c0_i32 = arith.constant 0 : i32
    %c0_i32_0 = arith.constant 0 : i32
    %c0_i32_1 = arith.constant 0 : i32
    return %c0_i32, %c0_i32_0 : i32, i32
  }
  func.func @transform_10(%arg0: i32) -> (i32, i32) {
    %c0_i32 = arith.constant 0 : i32
    %c0_i32_0 = arith.constant 0 : i32
    return %arg0, %c0_i32 : i32, i32
  }
}

module attributes {stable_mosaic.version = 11 : i64} {
  func.func @_attn_head_kernel(%arg0: i32, %arg1: i32, %arg2: memref<1x1x24x8xbf16, #tpu.memory_space<vmem>>, %arg3: memref<1x1x24x8xbf16, #tpu.memory_space<vmem>>, %arg4: memref<1x1x24x8xbf16, #tpu.memory_space<vmem>>, %arg5: memref<1x1x24x8xbf16, #tpu.memory_space<vmem>>) attributes {dimension_semantics = [#tpu.dimension_semantics<parallel>, #tpu.dimension_semantics<parallel>], iteration_bounds = array<i64: 2, 4>, scalar_prefetch = 0 : i64, scratch_operands = 0 : i64, tpu.core_type = #tpu.core_type<tc>, window_params = [{transform_indices = @transform_0, window_bounds = array<i64: 1, 1, 24, 8>}, {transform_indices = @transform_1, window_bounds = array<i64: 1, 1, 24, 8>}, {transform_indices = @transform_2, window_bounds = array<i64: 1, 1, 24, 8>}, {transform_indices = @transform_3, window_bounds = array<i64: 1, 1, 24, 8>}]} {
    %c0 = arith.constant 0 : index
    %c0_0 = arith.constant 0 : index
    %c0_1 = arith.constant 0 : index
    %c0_2 = arith.constant 0 : index
    %0 = vector.load %arg2[%c0, %c0_0, %c0_1, %c0_2] : memref<1x1x24x8xbf16, #tpu.memory_space<vmem>>, vector<1x1x24x8xbf16>
    %1 = vector.shape_cast %0 : vector<1x1x24x8xbf16> to vector<24x8xbf16>
    %c0_3 = arith.constant 0 : index
    %c0_4 = arith.constant 0 : index
    %c0_5 = arith.constant 0 : index
    %c0_6 = arith.constant 0 : index
    %2 = vector.load %arg3[%c0_3, %c0_4, %c0_5, %c0_6] : memref<1x1x24x8xbf16, #tpu.memory_space<vmem>>, vector<1x1x24x8xbf16>
    %3 = vector.shape_cast %2 : vector<1x1x24x8xbf16> to vector<24x8xbf16>
    %c0_7 = arith.constant 0 : index
    %c0_8 = arith.constant 0 : index
    %c0_9 = arith.constant 0 : index
    %c0_10 = arith.constant 0 : index
    %4 = vector.load %arg4[%c0_7, %c0_8, %c0_9, %c0_10] : memref<1x1x24x8xbf16, #tpu.memory_space<vmem>>, vector<1x1x24x8xbf16>
    %5 = vector.shape_cast %4 : vector<1x1x24x8xbf16> to vector<24x8xbf16>
    %cst = arith.constant dense<0.000000e+00> : vector<24x24xf32>
    %6 = tpu.matmul %1, %3, %cst {dimension_numbers = #tpu.dot_dimension_numbers<[1], [1], [0], [0], [0, 0, 1, 0], [], []>} : vector<24x8xbf16>, vector<24x8xbf16>, vector<24x24xf32> -> vector<24x24xf32>
    %7 = tpu.iota {dimensions = array<i32: 1>} : vector<24x24xi32>
    %c17_i32 = arith.constant 17 : i32
    %8 = vector.broadcast %c17_i32 : i32 to vector<24x24xi32>
    %9 = arith.cmpi slt, %7, %8 : vector<24x24xi32>
    %cst_11 = arith.constant -1.000000e+30 : f32
    %10 = vector.broadcast %cst_11 : f32 to vector<24x24xf32>
    %11 = arith.select %9, %6, %10 : vector<24x24xi1>, vector<24x24xf32>
    %cst_12 = arith.constant dense<0xFF800000> : vector<24xf32>
    %12 = vector.multi_reduction <maximumf>, %11, %cst_12 [1] : vector<24x24xf32> to vector<24xf32>
    %13 = vector.shape_cast %12 : vector<24xf32> to vector<24x1xf32>
    %14 = vector.broadcast %13 : vector<24x1xf32> to vector<24x24xf32>
    %15 = arith.subf %11, %14 : vector<24x24xf32>
    %16 = math.exp %15 : vector<24x24xf32>
    %cst_13 = arith.constant dense<0.000000e+00> : vector<24xf32>
    %17 = vector.multi_reduction <add>, %16, %cst_13 [1] : vector<24x24xf32> to vector<24xf32>
    %18 = vector.shape_cast %17 : vector<24xf32> to vector<24x1xf32>
    %19 = tpu.reciprocal %18 {approx = true} : vector<24x1xf32> -> vector<24x1xf32>
    %20 = vector.broadcast %19 : vector<24x1xf32> to vector<24x24xf32>
    %21 = arith.mulf %16, %20 : vector<24x24xf32>
    %22 = arith.truncf %21 : vector<24x24xf32> to vector<24x24xbf16>
    %cst_14 = arith.constant dense<0.000000e+00> : vector<24x8xf32>
    %23 = tpu.matmul %22, %5, %cst_14 {dimension_numbers = #tpu.dot_dimension_numbers<[1], [0], [0], [1], [0, 0, 1, 1], [], []>} : vector<24x24xbf16>, vector<24x8xbf16>, vector<24x8xf32> -> vector<24x8xf32>
    %24 = arith.truncf %23 : vector<24x8xf32> to vector<24x8xbf16>
    %c0_15 = arith.constant 0 : index
    %c0_16 = arith.constant 0 : index
    %c0_17 = arith.constant 0 : index
    %c0_18 = arith.constant 0 : index
    %25 = vector.load %arg5[%c0_15, %c0_16, %c0_17, %c0_18] : memref<1x1x24x8xbf16, #tpu.memory_space<vmem>>, vector<1x1x24x8xbf16>
    %26 = vector.shape_cast %25 : vector<1x1x24x8xbf16> to vector<24x8xbf16>
    %27 = vector.shape_cast %24 : vector<24x8xbf16> to vector<1x1x24x8xbf16>
    tpu.vector_store %arg5[%c0_15, %c0_16, %c0_17, %c0_18], %27 {strides = array<i32>} : memref<1x1x24x8xbf16, #tpu.memory_space<vmem>>, vector<1x1x24x8xbf16>,
    return
  }
  func.func @transform_0(%arg0: i32, %arg1: i32) -> (i32, i32, i32, i32) {
    %c0_i32 = arith.constant 0 : i32
    %c0_i32_0 = arith.constant 0 : i32
    %c0_i32_1 = arith.constant 0 : i32
    return %arg0, %arg1, %c0_i32, %c0_i32_0 : i32, i32, i32, i32
  }
  func.func @transform_1(%arg0: i32, %arg1: i32) -> (i32, i32, i32, i32) {
    %c0_i32 = arith.constant 0 : i32
    %c0_i32_0 = arith.constant 0 : i32
    %c0_i32_1 = arith.constant 0 : i32
    return %arg0, %arg1, %c0_i32, %c0_i32_0 : i32, i32, i32, i32
  }
  func.func @transform_2(%arg0: i32, %arg1: i32) -> (i32, i32, i32, i32) {
    %c0_i32 = arith.constant 0 : i32
    %c0_i32_0 = arith.constant 0 : i32
    %c0_i32_1 = arith.constant 0 : i32
    return %arg0, %arg1, %c0_i32, %c0_i32_0 : i32, i32, i32, i32
  }
  func.func @transform_3(%arg0: i32, %arg1: i32) -> (i32, i32, i32, i32) {
    %c0_i32 = arith.constant 0 : i32
    %c0_i32_0 = arith.constant 0 : i32
    %c0_i32_1 = arith.constant 0 : i32
    return %arg0, %arg1, %c0_i32, %c0_i32_0 : i32, i32, i32, i32
  }
}

module attributes {stable_mosaic.version = 11 : i64} {
  func.func @_ln_head_kernel(%arg0: i32, %arg1: memref<2x32xf32, #tpu.memory_space<vmem>>, %arg2: memref<1x32xf32, #tpu.memory_space<vmem>>, %arg3: memref<1x32xf32, #tpu.memory_space<vmem>>, %arg4: memref<32x10xbf16, #tpu.memory_space<vmem>>, %arg5: memref<1x10xf32, #tpu.memory_space<vmem>>, %arg6: memref<2x10xf32, #tpu.memory_space<vmem>>) attributes {dimension_semantics = [#tpu.dimension_semantics<parallel>], iteration_bounds = array<i64: 1>, scalar_prefetch = 0 : i64, scratch_operands = 0 : i64, tpu.core_type = #tpu.core_type<tc>, window_params = [{transform_indices = @transform_0, window_bounds = array<i64: 2, 32>}, {pipeline_mode = #tpu.pipeline_mode<synchronous>, transform_indices = @transform_1, window_bounds = array<i64: 1, 32>}, {pipeline_mode = #tpu.pipeline_mode<synchronous>, transform_indices = @transform_2, window_bounds = array<i64: 1, 32>}, {pipeline_mode = #tpu.pipeline_mode<synchronous>, transform_indices = @transform_3, window_bounds = array<i64: 32, 10>}, {pipeline_mode = #tpu.pipeline_mode<synchronous>, transform_indices = @transform_4, window_bounds = array<i64: 1, 10>}, {transform_indices = @transform_5, window_bounds = array<i64: 2, 10>}]} {
    %c0 = arith.constant 0 : index
    %c0_0 = arith.constant 0 : index
    %0 = vector.load %arg1[%c0, %c0_0] : memref<2x32xf32, #tpu.memory_space<vmem>>, vector<2x32xf32>
    %c0_1 = arith.constant 0 : index
    %c0_2 = arith.constant 0 : index
    %1 = vector.load %arg2[%c0_1, %c0_2] : memref<1x32xf32, #tpu.memory_space<vmem>>, vector<1x32xf32>
    %c0_3 = arith.constant 0 : index
    %c0_4 = arith.constant 0 : index
    %2 = vector.load %arg3[%c0_3, %c0_4] : memref<1x32xf32, #tpu.memory_space<vmem>>, vector<1x32xf32>
    %cst = arith.constant dense<0.000000e+00> : vector<2xf32>
    %3 = vector.multi_reduction <add>, %0, %cst [1] : vector<2x32xf32> to vector<2xf32>
    %4 = vector.shape_cast %3 : vector<2xf32> to vector<2x1xf32>
    %cst_5 = arith.constant 3.200000e+01 : f32
    %5 = vector.broadcast %cst_5 : f32 to vector<2x1xf32>
    %6 = arith.divf %4, %5 : vector<2x1xf32>
    %7 = vector.broadcast %6 : vector<2x1xf32> to vector<2x32xf32>
    %8 = arith.subf %0, %7 : vector<2x32xf32>
    %9 = arith.mulf %8, %8 : vector<2x32xf32>
    %cst_6 = arith.constant dense<0.000000e+00> : vector<2xf32>
    %10 = vector.multi_reduction <add>, %9, %cst_6 [1] : vector<2x32xf32> to vector<2xf32>
    %11 = vector.shape_cast %10 : vector<2xf32> to vector<2x1xf32>
    %cst_7 = arith.constant 3.200000e+01 : f32
    %12 = vector.broadcast %cst_7 : f32 to vector<2x1xf32>
    %13 = arith.divf %11, %12 : vector<2x1xf32>
    %14 = vector.broadcast %6 : vector<2x1xf32> to vector<2x32xf32>
    %15 = arith.subf %0, %14 : vector<2x32xf32>
    %cst_8 = arith.constant 9.99999974E-6 : f32
    %16 = vector.broadcast %cst_8 : f32 to vector<2x1xf32>
    %17 = arith.addf %13, %16 : vector<2x1xf32>
    %18 = math.rsqrt %17 : vector<2x1xf32>
    %19 = vector.broadcast %18 : vector<2x1xf32> to vector<2x32xf32>
    %20 = arith.mulf %15, %19 : vector<2x32xf32>
    %21 = vector.broadcast %1 : vector<1x32xf32> to vector<2x32xf32>
    %22 = arith.mulf %20, %21 : vector<2x32xf32>
    %23 = vector.broadcast %2 : vector<1x32xf32> to vector<2x32xf32>
    %24 = arith.addf %22, %23 : vector<2x32xf32>
    %25 = arith.truncf %24 : vector<2x32xf32> to vector<2x32xbf16>
    %c0_9 = arith.constant 0 : index
    %c0_10 = arith.constant 0 : index
    %26 = vector.load %arg4[%c0_9, %c0_10] : memref<32x10xbf16, #tpu.memory_space<vmem>>, vector<32x10xbf16>
    %cst_11 = arith.constant dense<0.000000e+00> : vector<2x10xf32>
    %27 = tpu.matmul %25, %26, %cst_11 {dimension_numbers = #tpu.dot_dimension_numbers<[1], [0], [0], [1], [0, 0, 1, 1], [], []>} : vector<2x32xbf16>, vector<32x10xbf16>, vector<2x10xf32> -> vector<2x10xf32>
    %c0_12 = arith.constant 0 : index
    %c0_13 = arith.constant 0 : index
    %28 = vector.load %arg5[%c0_12, %c0_13] : memref<1x10xf32, #tpu.memory_space<vmem>>, vector<1x10xf32>
    %29 = vector.broadcast %28 : vector<1x10xf32> to vector<2x10xf32>
    %30 = arith.addf %27, %29 : vector<2x10xf32>
    %c0_14 = arith.constant 0 : index
    %c0_15 = arith.constant 0 : index
    %31 = vector.load %arg6[%c0_14, %c0_15] : memref<2x10xf32, #tpu.memory_space<vmem>>, vector<2x10xf32>
    tpu.vector_store %arg6[%c0_14, %c0_15], %30 {strides = array<i32>} : memref<2x10xf32, #tpu.memory_space<vmem>>, vector<2x10xf32>,
    return
  }
  func.func @transform_0(%arg0: i32) -> (i32, i32) {
    %c0_i32 = arith.constant 0 : i32
    %c0_i32_0 = arith.constant 0 : i32
    return %arg0, %c0_i32 : i32, i32
  }
  func.func @transform_1(%arg0: i32) -> (i32, i32) {
    %c0_i32 = arith.constant 0 : i32
    %c0_i32_0 = arith.constant 0 : i32
    %c0_i32_1 = arith.constant 0 : i32
    return %c0_i32, %c0_i32_0 : i32, i32
  }
  func.func @transform_2(%arg0: i32) -> (i32, i32) {
    %c0_i32 = arith.constant 0 : i32
    %c0_i32_0 = arith.constant 0 : i32
    %c0_i32_1 = arith.constant 0 : i32
    return %c0_i32, %c0_i32_0 : i32, i32
  }
  func.func @transform_3(%arg0: i32) -> (i32, i32) {
    %c0_i32 = arith.constant 0 : i32
    %c0_i32_0 = arith.constant 0 : i32
    %c0_i32_1 = arith.constant 0 : i32
    return %c0_i32, %c0_i32_0 : i32, i32
  }
  func.func @transform_4(%arg0: i32) -> (i32, i32) {
    %c0_i32 = arith.constant 0 : i32
    %c0_i32_0 = arith.constant 0 : i32
    %c0_i32_1 = arith.constant 0 : i32
    return %c0_i32, %c0_i32_0 : i32, i32
  }
  func.func @transform_5(%arg0: i32) -> (i32, i32) {
    %c0_i32 = arith.constant 0 : i32
    %c0_i32_0 = arith.constant 0 : i32
    return %arg0, %c0_i32 : i32, i32
  }
}

</mosaic_0001>

<bundles_post_ra>
// kernel: vit_forward.8
= control target key start
LH: loop header
LB: loop body
LE: loop exit
PB: predicated region body
PF: predicated region fallthrough
CT: control target
= control target key end

     0   :  { %vm60_vm0 = vcmask 523264   ;;  %vm116_vm1 = vcmask 261120   ;;  %s213_s1 = inlined_call_operand.vmem [shape: bf16[64,32], index: 1, kind: input, shape index: {}]   ;;  %s214_s0 = inlined_call_operand.vmem [shape: f32[32,64], index: 0, kind: input, shape index: {}]   ;;  %s215_s2 = inlined_call_operand.vmem [shape: f32[1,32], index: 2, kind: input, shape index: {}]   ;;  %s216_s3 = inlined_call_operand.vmem [shape: f32[32,32], index: 3, kind: output, shape index: {}]  }
   0x1   :  { %v150_v0 = vld [vmem:[%s213_s1] sm:$0xff]   ;;  %v151_v1 = vld [vmem:[%s213_s1 + $0x8] sm:$0xff]   ;;  %v152_v2 = vld [vmem:[%s213_s1 + $0x10] sm:$0xff]  }
   0x2   :  { %138 = vmatprep.subr.bf16.mxu0 %v150_v0  ;;  %v15_v3 = vld [vmem:[%s214_s0] sm:$0xff]  ;;  %v16_v4 = vld [vmem:[%s214_s0 + $0x8] sm:$0xff]  ;;  %v153_v6 = vld [vmem:[%s213_s1 + $0x18] sm:$0xff]  }
   0x3   :  { %139 = vmatpush3.bf16.msra.mxu0 %v150_v0  ;;  %v19_v5 = vpack.c.bf16 %v16_v4, %v15_v3  ;;  %v17_v7 = vld [vmem:[%s214_s0 + $0x10] sm:$0xff]  ;;  %v18_v8 = vld [vmem:[%s214_s0 + $0x18] sm:$0xff]  ;;  %v125_v10 = vld [vmem:[%s215_s2] ss:$0 sm:$0xff] }
   0x4   :  { %140 = vmatprep.subr.bf16.mxu0 %v151_v1  ;;  %v20_v9 = vpack.c.bf16 %v18_v8, %v17_v7 }
   0x5   :  { %146 = vmatprep.mubr.msk.bf16.mxu0 %vm60_vm0, %v19_v5 }
   0x7   :  { %141 = vmatpush3.bf16.msra.mxu0 %v151_v1 }
   0x8   :  { %142 = vmatprep.subr.bf16.mxu0 %v152_v2 }
   0xb   :  { %143 = vmatpush3.bf16.msra.mxu0 %v152_v2 }
   0xc   :  { %144 = vmatprep.subr.bf16.mxu0 %v153_v6 }
   0xf   :  { %145 = vmatpush3.bf16.msra.mxu0 %v153_v6 }
  0x12   :  { %147 = vmatmul.mubr.msk.bf16.vlgmr.msra.gmra.mrb[0].mxu0 %vm60_vm0, %v20_v9 }
  0xe5   :  { %v148_v11 = vpop.f32.mrb[0].mxu0 }
  0xe6   :  { %v110_v12 = vadd.f32 %v148_v11, %v125_v10  ;;  %v101_v13 = vpop.f32.mrb[1].mxu0 }
  0xe7   :  { %v102_v14 = vadd.f32 %v125_v10, %v101_v13  ;;  %v149_v15 = vpop.f32.mrb[2].mxu0 }
  0xe8   :  { %119 = vst.msk [vmem:[%s216_s3 + $0x10] sm:$0xff] %vm116_vm1, %v110_v12  ;;  %v113_v16 = vadd.f32 %v149_v15, %v125_v10  ;;  %v104_v17 = vpop.f32.mrb[3].mxu0 }
  0xe9   :  { %117 = vst.msk [vmem:[%s216_s3] sm:$0xff] %vm116_vm1, %v102_v14  ;;  %v105_v18 = vadd.f32 %v125_v10, %v104_v17 }
  0xea   :  { %120 = vst.msk [vmem:[%s216_s3 + $0x18] sm:$0xff] %vm116_vm1, %v113_v16 }
  0xeb   :  { %118 = vst.msk [vmem:[%s216_s3 + $0x8] sm:$0xff] %vm116_vm1, %v105_v18 }

// kernel: vit_forward.9
= control target key start
LH: loop header
LB: loop body
LE: loop exit
PB: predicated region body
PF: predicated region fallthrough
CT: control target
= control target key end

     0   :  { %vm26_vm0 = vcmask 261120   ;;  %v310_v43 = vmov 0.0   ;;  %vm311_vm1 = vmmov 0   ;;  %vm239_vm2 = vcmask 781312   ;;  %s446_s0 = inlined_call_operand.vmem [shape: f32[48,32], index: 0, kind: input, shape index: {}]   ;;  %s447_s3 = inlined_call_operand.vmem [shape: bf16[32,96], index: 3, kind: input, shape index: {}]   ;;  %s448_s1 = inlined_call_operand.vmem [shape: f32[1,32], index: 1, kind: input, shape index: {}]   ;;  %s449_s2 = inlined_call_operand.vmem [shape: f32[1,32], index: 2, kind: input, shape index: {}]   ;;  %s450_s4 = inlined_call_operand.vmem [shape: bf16[48,96], index: 4, kind: output, shape index: {}]  }
   0x1   :  { %v20_v0 = vld [vmem:[%s446_s0 + $0x10] sm:$0xff]  ;;  %v21_v1 = vld [vmem:[%s446_s0 + $0x18] sm:$0xff]  ;;  %v18_v2 = vld [vmem:[%s446_s0] sm:$0xff]  ;;  %290 = vmatprep.subr.bf16.mxu1 %v310_v43  ;;  %274 = vmatprep.subr.bf16.mxu0 %v310_v43 }
   0x2   :  { %v33_v3 = vsel %vm26_vm0, %v20_v0, 0.0  ;;  %v27_v4 = vsel %vm26_vm0, %v18_v2, 0.0  ;;  %v19_v5 = vld [vmem:[%s446_s0 + $0x8] sm:$0xff]  ;;  %v36_v6 = vsel %vm26_vm0, %v21_v1, 0.0  ;;  %v22_v8 = vld [vmem:[%s446_s0 + $0x20] sm:$0xff]  ;;  %282 = vmatprep.mubr.msk.bf16.mxu1 %vm311_vm1, %v310_v43  ;;  %278 = vmatprep.mubr.msk.bf16.mxu0 %vm311_vm1, %v310_v43 }
   0x3   :  { %34 = vadd.xlane.f32.xlu0 %v33_v3  ;;  %28 = vadd.xlane.f32.xlu1 %v27_v4  ;;  %v30_v7 = vsel %vm26_vm0, %v19_v5, 0.0  ;;  %v23_v9 = vld [vmem:[%s446_s0 + $0x28] sm:$0xff]  ;;  %v39_v10 = vsel %vm26_vm0, %v22_v8, 0.0  ;;  %v296_v42 = vld [vmem:[%s447_s3] sm:$0xff]  }
   0x4   :  { %v42_v11 = vsel %vm26_vm0, %v23_v9, 0.0  ;;  %292 = vmatpush3.bf16.msra.mxu1 %v296_v42  ;;  %275 = vmatpush3.bf16.msra.mxu0 %v296_v42  ;;  %v297_v44 = vld [vmem:[%s447_s3 + $0x8] sm:$0xff]  }
   0x5   :  { %291 = vmatprep.subr.bf16.mxu1 %v310_v43  ;;  %276 = vmatprep.subr.bf16.mxu0 %v310_v43 }
   0x7   :  { %37 = vadd.xlane.f32.xlu0 %v36_v6  ;;  %31 = vadd.xlane.f32.xlu1 %v30_v7  ;;  %v251_v7 = vld [vmem:[%s449_s2] ss:$0 sm:$0xff] }
   0x8   :  { %293 = vmatpush3.bf16.msra.mxu1 %v297_v44  ;;  %277 = vmatpush3.bf16.msra.mxu0 %v297_v44 }
   0xb   :  { %40 = vadd.xlane.f32.xlu0 %v39_v10  ;;  %43 = vadd.xlane.f32.xlu1 %v42_v11 }
  0x90   :  { %v35_v12 = vpop.xlane.xlu0 %34  ;;  %v29_v13 = vpop.xlane.xlu1 %28 }
  0x91   :  { %v48_v14 = vmul.f32 0.03125, %v35_v12  ;;  %v46_v15 = vmul.f32 0.03125, %v29_v13 }
  0x93   :  { %v361_v16 = vsub.f32 %v20_v0, %v48_v14  ;;  %v363_v17 = vsub.f32 %v18_v2, %v46_v15 }
  0x94   :  { %v38_v18 = vpop.xlane.xlu0 %37  ;;  %v32_v19 = vpop.xlane.xlu1 %31 }
  0x95   :  { %v49_v20 = vmul.f32 0.03125, %v38_v18  ;;  %v60_v21 = vmul.f32 %v361_v16, %v361_v16  ;;  %v47_v22 = vmul.f32 0.03125, %v32_v19  ;;  %v58_v23 = vmul.f32 %v363_v17, %v363_v17 }
  0x97   :  { %v369_v24 = vsub.f32 %v21_v1, %v49_v20  ;;  %v70_v25 = vsel %vm26_vm0, %v60_v21, 0.0  ;;  %v372_v26 = vsub.f32 %v19_v5, %v47_v22  ;;  %v64_v28 = vsel %vm26_vm0, %v58_v23, 0.0  ;;  %v250_v1 = vld [vmem:[%s448_s1] ss:$0 sm:$0xff] }
  0x98   :  { %71 = vadd.xlane.f32.xlu0 %v70_v25  ;;  %v41_v27 = vpop.xlane.xlu0 %40  ;;  %v44_v29 = vpop.xlane.xlu1 %43 }
  0x99   :  { %v50_v30 = vmul.f32 0.03125, %v41_v27  ;;  %v61_v31 = vmul.f32 %v369_v24, %v369_v24  ;;  %v51_v32 = vmul.f32 0.03125, %v44_v29  ;;  %v59_v33 = vmul.f32 %v372_v26, %v372_v26 }
  0x9b   :  { %v379_v34 = vsub.f32 %v22_v8, %v50_v30  ;;  %v73_v35 = vsel %vm26_vm0, %v61_v31, 0.0  ;;  %v382_v36 = vsub.f32 %v23_v9, %v51_v32  ;;  %v67_v38 = vsel %vm26_vm0, %v59_v33, 0.0 }
  0x9c   :  { %74 = vadd.xlane.f32.xlu1 %v73_v35  ;;  %65 = vadd.xlane.f32.xlu0 %v64_v28 }
  0x9d   :  { %v62_v37 = vmul.f32 %v379_v34, %v379_v34  ;;  %v63_v39 = vmul.f32 %v382_v36, %v382_v36 }
  0x9f   :  { %v76_v40 = vsel %vm26_vm0, %v62_v37, 0.0  ;;  %v79_v41 = vsel %vm26_vm0, %v63_v39, 0.0 }
  0xa0   :  { %77 = vadd.xlane.f32.xlu0 %v76_v40  ;;  %68 = vadd.xlane.f32.xlu1 %v67_v38 }
  0xa4   :  { %80 = vadd.xlane.f32.xlu1 %v79_v41 }
 0x125   :  { %v72_v45 = vpop.xlane.xlu0 %71 }
 0x126   :  { %v84_v46 = vmul.f32 0.03125, %v72_v45 }
 0x128   :  { %v90_v47 = vadd.f32 1e-05, %v84_v46 }
 0x129   :  { %v66_v48 = vpop.xlane.xlu0 %65  ;;  %v75_v49 = vpop.xlane.xlu1 %74 }
 0x12a   :  { %298 = vrsqrt.f32 %v90_v47  ;;  %v82_v50 = vmul.f32 0.03125, %v66_v48  ;;  %v85_v51 = vmul.f32 0.03125, %v75_v49 }
 0x12c   :  { %v88_v52 = vadd.f32 1e-05, %v82_v50  ;;  %v91_v53 = vadd.f32 1e-05, %v85_v51 }
 0x12d   :  { %v78_v54 = vpop.xlane.xlu0 %77  ;;  %v69_v55 = vpop.xlane.xlu1 %68 }
 0x12e   :  { %300 = vrsqrt.f32 %v88_v52  ;;  %v86_v56 = vmul.f32 0.03125, %v78_v54  ;;  %v83_v57 = vmul.f32 0.03125, %v69_v55 }
 0x12f   :  { %302 = vrsqrt.f32 %v91_v53 }
 0x130   :  { %v92_v58 = vadd.f32 1e-05, %v86_v56  ;;  %v89_v59 = vadd.f32 1e-05, %v83_v57 }
 0x131   :  { %v81_v60 = vpop.xlane.xlu1 %80 }
 0x132   :  { %304 = vrsqrt.f32 %v92_v58  ;;  %v87_v61 = vmul.f32 0.03125, %v81_v60 }
 0x133   :  { %306 = vrsqrt.f32 %v89_v59 }
 0x134   :  { %v299_v62 = vpop.eup %298  ;;  %v93_v63 = vadd.f32 1e-05, %v87_v61 }
 0x135   :  { %v102_v0 = vmul.f32 %v299_v62, %v361_v16 }
 0x136   :  { %308 = vrsqrt.f32 %v93_v63 }
 0x137   :  { %v114_v6 = vmul.f32 %v250_v1, %v102_v0 }
 0x138   :  { %v301_v2 = vpop.eup %300 }
 0x139   :  { %v303_v3 = vpop.eup %302  ;;  %v100_v4 = vmul.f32 %v301_v2, %v363_v17  ;;  %v126_v13 = vadd.f32 %v251_v7, %v114_v6 }
 0x13a   :  { %v103_v5 = vmul.f32 %v303_v3, %v369_v24 }
 0x13b   :  { %v112_v15 = vmul.f32 %v250_v1, %v100_v4 }
 0x13c   :  { %v305_v8 = vpop.eup %304  ;;  %v115_v9 = vmul.f32 %v250_v1, %v103_v5 }
 0x13d   :  { %v307_v10 = vpop.eup %306  ;;  %v104_v11 = vmul.f32 %v305_v8, %v379_v34  ;;  %v124_v21 = vadd.f32 %v251_v7, %v112_v15 }
 0x13e   :  { %v101_v12 = vmul.f32 %v307_v10, %v372_v26  ;;  %v127_v14 = vadd.f32 %v251_v7, %v115_v9 }
 0x13f   :  { %v116_v20 = vmul.f32 %v250_v1, %v104_v11 }
 0x140   :  { %v309_v16 = vpop.eup %308  ;;  %v131_v18 = vpack.c.bf16 %v127_v14, %v126_v13  ;;  %v113_v17 = vmul.f32 %v250_v1, %v101_v12 }
 0x141   :  { %v105_v19 = vmul.f32 %v309_v16, %v382_v36  ;;  %v128_v25 = vadd.f32 %v251_v7, %v116_v20 }
 0x142   :  { %283 = vmatmul.mubr.msk.bf16.vlgmr.msra.gmra.mrb[0].mxu1 %vm26_vm0, %v131_v18  ;;  %v125_v22 = vadd.f32 %v251_v7, %v113_v17 }
 0x143   :  { %286 = vmatprep.mubr.msk.bf16.mxu1 %vm311_vm1, %v310_v43  ;;  %v117_v23 = vmul.f32 %v250_v1, %v105_v19 }
 0x144   :  { %v130_v24 = vpack.c.bf16 %v125_v22, %v124_v21 }
 0x145   :  { %v129_v26 = vadd.f32 %v251_v7, %v117_v23 }
 0x146   :  { %279 = vmatmul.mubr.msk.bf16.vlgmr.msra.gmra.mrb[0].mxu0 %vm26_vm0, %v130_v24 }
 0x147   :  { %v132_v27 = vpack.c.bf16 %v129_v26, %v128_v25 }
 0x14a   :  { %287 = vmatmul.mubr.msk.bf16.gmra.mrb[4].mxu1 %vm26_vm0, %v132_v27 }
 0x215   :  { %v200_v28 = vpop.f32.mrb[0].mxu1 }
 0x216   :  { %v265_v29 = vpack.c.bf16 %v200_v28, %v200_v28  ;;  %v284_v30 = vpop.f32.mrb[1].mxu1 }
 0x217   :  { %v203_v31 = vpop.f32.mrb[2].mxu1 }
 0x218   :  { %242 = vst.msk [vmem:[%s450_s4 + $0x8] sm:$0xf] %vm239_vm2, %v265_v29  ;;  %v266_v32 = vpack.c.bf16 %v203_v31, %v203_v31  ;;  %v285_v33 = vpop.f32.mrb[3].mxu1 }
 0x219   :  { %v192_v34 = vpop.f32.mrb[0].mxu0 }
 0x21a   :  { %243 = vst.msk [vmem:[%s450_s4 + $0xc] sm:$0xf] %vm239_vm2, %v266_v32  ;;  %v263_v35 = vpack.c.bf16 %v192_v34, %v192_v34  ;;  %v280_v36 = vpop.f32.mrb[1].mxu0 }
 0x21b   :  { %v195_v37 = vpop.f32.mrb[2].mxu0 }
 0x21c   :  { %240 = vst.msk [vmem:[%s450_s4] sm:$0xf] %vm239_vm2, %v263_v35  ;;  %v264_v38 = vpack.c.bf16 %v195_v37, %v195_v37  ;;  %v281_v39 = vpop.f32.mrb[3].mxu0 }
 0x21d   :  { %v208_v40 = vpop.f32.mrb[4].mxu1 }
 0x21e   :  { %241 = vst.msk [vmem:[%s450_s4 + $0x4] sm:$0xf] %vm239_vm2, %v264_v38  ;;  %v267_v41 = vpack.c.bf16 %v208_v40, %v208_v40  ;;  %v288_v42 = vpop.f32.mrb[5].mxu1 }
 0x21f   :  { %v211_v43 = vpop.f32.mrb[6].mxu1 }
 0x220   :  { %244 = vst.msk [vmem:[%s450_s4 + $0x10] sm:$0xf] %vm239_vm2, %v267_v41  ;;  %v268_v44 = vpack.c.bf16 %v211_v43, %v211_v43  ;;  %v289_v45 = vpop.f32.mrb[7].mxu1 }
 0x222   :  { %245 = vst.msk [vmem:[%s450_s4 + $0x14] sm:$0xf] %vm239_vm2, %v268_v44 }

// kernel: vit_forward.11
= control target key start
LH: loop header
LB: loop body
LE: loop exit
PB: predicated region body
PF: predicated region fallthrough
CT: control target
= control target key end

     0   :  { %v682_v0 = vmov 0.0   ;;  %vm683_vm0 = vmmov 0   ;;  %vm79_vm1 = vcmask 261120   ;;  %vm451_vm2 = vcmask 523264   ;;  %s923_s1 = inlined_call_operand.vmem [shape: bf16[32,32], index: 1, kind: input, shape index: {}]   ;;  %s924_s0 = inlined_call_operand.vmem [shape: bf16[48,32], index: 0, kind: input, shape index: {}]   ;;  %s925_s3 = inlined_call_operand.vmem [shape: f32[48,32], index: 3, kind: input, shape index: {}]   ;;  %s926_s2 = inlined_call_operand.vmem [shape: f32[1,32], index: 2, kind: input, shape index: {}]   ;;  %s927_s6 = inlined_call_operand.vmem [shape: bf16[32,64], index: 6, kind: input, shape index: {}]   ;;  %s928_s4 = inlined_call_operand.vmem [shape: f32[1,32], index: 4, kind: input, shape index: {}]   ;;  %s929_s5 = inlined_call_operand.vmem [shape: f32[1,32], index: 5, kind: input, shape index: {}]   ;;  %s930_s8 = inlined_call_operand.vmem [shape: bf16[64,32], index: 8, kind: input, shape index: {}]   ;;  %s931_s7 = inlined_call_operand.vmem [shape: f32[1,64], index: 7, kind: input, shape index: {}]   ;;  %s932_s9 = inlined_call_operand.vmem [shape: f32[1,32], index: 9, kind: input, shape index: {}]   ;;  %s933_s10 = inlined_call_operand.vmem [shape: f32[48,32], index: 10, kind: output, shape index: {}]  }
   0x1   :  { %589 = vmatprep.subr.bf16.mxu0 %v682_v0  ;;  %v647_v1 = vld [vmem:[%s923_s1] sm:$0xff]   ;;  %593 = vmatprep.mubr.msk.bf16.mxu0 %vm683_vm0, %v682_v0  ;;  %v648_v2 = vld [vmem:[%s923_s1 + $0x8] sm:$0xff]   ;;  %v651_v4 = vld [vmem:[%s924_s0 + $0x10] sm:$0xff]  }
   0x2   :  { %641 = vmatprep.subr.bf16.mxu1 %v682_v0  ;;  %601 = vmatprep.mubr.msk.bf16.mxu1 %vm683_vm0, %v682_v0  ;;  %v649_v3 = vld [vmem:[%s924_s0] sm:$0xff]   ;;  %v650_v5 = vld [vmem:[%s924_s0 + $0x8] sm:$0xff]   ;;  %v38_v24 = vld [vmem:[%s925_s3 + $0x10] sm:$0xff] }
   0x3   :  { %590 = vmatpush3.bf16.msra.mxu0 %v647_v1  ;;  %643 = vmatpush3.bf16.msra.mxu1 %v647_v1  ;;  %v36_v6 = vld [vmem:[%s925_s3] sm:$0xff]  ;;  %v37_v9 = vld [vmem:[%s925_s3 + $0x8] sm:$0xff]  ;;  %v39_v27 = vld [vmem:[%s925_s3 + $0x18] sm:$0xff] }
   0x4   :  { %591 = vmatprep.subr.bf16.mxu0 %v682_v0  ;;  %642 = vmatprep.subr.bf16.mxu1 %v682_v0  ;;  %v555_v8 = vld [vmem:[%s926_s2] ss:$0 sm:$0xff]  ;;  %v41_v28 = vld [vmem:[%s925_s3 + $0x28] sm:$0xff] }
   0x5   :  { %v40_v10 = vld [vmem:[%s925_s3 + $0x20] sm:$0xff] }
   0x7   :  { %592 = vmatpush3.bf16.msra.mxu0 %v648_v2  ;;  %644 = vmatpush3.bf16.msra.mxu1 %v648_v2 }
   0x8   :  { %605 = vmatprep.subr.bf16.mxu1 %v682_v0  ;;  %621 = vmatprep.subr.bf16.mxu0 %v682_v0 }
   0xa   :  { %594 = vmatmul.mubr.msk.bf16.vlgmr.msra.gmra.mrb[0].mxu0 %vm79_vm1, %v649_v3  ;;  %602 = vmatmul.mubr.msk.bf16.vlgmr.msra.gmra.mrb[0].mxu1 %vm79_vm1, %v651_v4 }
   0xb   :  { %597 = vmatprep.mubr.msk.bf16.mxu0 %vm683_vm0, %v682_v0  ;;  %609 = vmatprep.mubr.msk.bf16.mxu1 %vm683_vm0, %v682_v0 }
  0x12   :  { %598 = vmatmul.mubr.msk.bf16.gmra.mrb[4].mxu0 %vm79_vm1, %v650_v5 }
  0x13   :  { %629 = vmatprep.mubr.msk.bf16.mxu0 %vm683_vm0, %v682_v0 }
  0xdd   :  { %v123_v7 = vpop.f32.mrb[0].mxu0  ;;  %v139_v11 = vpop.f32.mrb[0].mxu1 }
  0xde   :  { %v146_v12 = vadd.f32 %v123_v7, %v36_v6  ;;  %v595_v13 = vpop.f32.mrb[1].mxu0  ;;  %v603_v14 = vpop.f32.mrb[1].mxu1  ;;  %v150_v20 = vadd.f32 %v139_v11, %v40_v10  ;;  %v652_v10 = vld [vmem:[%s927_s6] sm:$0xff]   ;;  %v653_v11 = vld [vmem:[%s927_s6 + $0x8] sm:$0xff]  }
  0xdf   :  { %v126_v15 = vpop.f32.mrb[2].mxu0  ;;  %v142_v16 = vpop.f32.mrb[2].mxu1  ;;  %606 = vmatpush3.bf16.msra.mxu1 %v652_v10 }
  0xe0   :  { %v785_v17 = vadd.f32 %v555_v8, %v146_v12  ;;  %v147_v18 = vadd.f32 %v126_v15, %v37_v9  ;;  %v596_v19 = vpop.f32.mrb[3].mxu0  ;;  %v604_v21 = vpop.f32.mrb[3].mxu1  ;;  %v794_v25 = vadd.f32 %v555_v8, %v150_v20  ;;  %v151_v37 = vadd.f32 %v142_v16, %v41_v28  ;;  %607 = vmatprep.subr.bf16.mxu1 %v682_v0 }
  0xe2   :  { %v787_v22 = vadd.f32 %v555_v8, %v147_v18  ;;  %v167_v23 = vsel %vm79_vm1, %v785_v17, 0.0  ;;  %v179_v36 = vsel %vm79_vm1, %v794_v25, 0.0  ;;  %v812_v40 = vadd.f32 %v555_v8, %v151_v37 }
  0xe3   :  { %168 = vadd.xlane.f32.xlu0 %v167_v23  ;;  %608 = vmatpush3.bf16.msra.mxu1 %v653_v11 }
  0xe4   :  { %v170_v31 = vsel %vm79_vm1, %v787_v22, 0.0  ;;  %v182_v42 = vsel %vm79_vm1, %v812_v40, 0.0 }
  0xe5   :  { %v131_v26 = vpop.f32.mrb[4].mxu0 }
  0xe6   :  { %v148_v29 = vadd.f32 %v131_v26, %v38_v24  ;;  %v599_v30 = vpop.f32.mrb[5].mxu0 }
  0xe7   :  { %171 = vadd.xlane.f32.xlu0 %v170_v31  ;;  %v134_v32 = vpop.f32.mrb[6].mxu0 }
  0xe8   :  { %v804_v33 = vadd.f32 %v555_v8, %v148_v29  ;;  %v149_v34 = vadd.f32 %v134_v32, %v39_v27  ;;  %v600_v35 = vpop.f32.mrb[7].mxu0 }
  0xea   :  { %v808_v38 = vadd.f32 %v555_v8, %v149_v34  ;;  %v173_v39 = vsel %vm79_vm1, %v804_v33, 0.0  ;;  %v556_v34 = vld [vmem:[%s928_s4] ss:$0 sm:$0xff] }
  0xeb   :  { %180 = vadd.xlane.f32.xlu0 %v179_v36  ;;  %174 = vadd.xlane.f32.xlu1 %v173_v39 }
  0xec   :  { %v176_v41 = vsel %vm79_vm1, %v808_v38, 0.0 }
  0xef   :  { %177 = vadd.xlane.f32.xlu1 %v176_v41 }
  0xf3   :  { %183 = vadd.xlane.f32.xlu1 %v182_v42  ;;  %v557_v42 = vld [vmem:[%s929_s5] ss:$0 sm:$0xff] }
 0x170   :  { %v169_v43 = vpop.xlane.xlu0 %168 }
 0x171   :  { %v186_v44 = vmul.f32 0.03125, %v169_v43 }
 0x173   :  { %v192_v45 = vsub.f32 %v785_v17, %v186_v44 }
 0x174   :  { %v172_v46 = vpop.xlane.xlu0 %171 }
 0x175   :  { %v187_v47 = vmul.f32 0.03125, %v172_v46  ;;  %v198_v48 = vmul.f32 %v192_v45, %v192_v45 }
 0x177   :  { %v820_v49 = vsub.f32 %v787_v22, %v187_v47  ;;  %v204_v50 = vsel %vm79_vm1, %v198_v48, 0.0 }
 0x178   :  { %205 = vadd.xlane.f32.xlu0 %v204_v50  ;;  %v181_v51 = vpop.xlane.xlu0 %180  ;;  %v175_v52 = vpop.xlane.xlu1 %174 }
 0x179   :  { %v190_v53 = vmul.f32 0.03125, %v181_v51  ;;  %v188_v54 = vmul.f32 0.03125, %v175_v52  ;;  %v199_v55 = vmul.f32 %v820_v49, %v820_v49 }
 0x17b   :  { %v826_v56 = vsub.f32 %v794_v25, %v190_v53  ;;  %v829_v57 = vsub.f32 %v804_v33, %v188_v54  ;;  %v207_v58 = vsel %vm79_vm1, %v199_v55, 0.0 }
 0x17c   :  { %208 = vadd.xlane.f32.xlu1 %v207_v58  ;;  %v178_v59 = vpop.xlane.xlu1 %177 }
 0x17d   :  { %v189_v60 = vmul.f32 0.03125, %v178_v59  ;;  %v200_v61 = vmul.f32 %v829_v57, %v829_v57  ;;  %v202_v1 = vmul.f32 %v826_v56, %v826_v56 }
 0x17f   :  { %v195_v62 = vsub.f32 %v808_v38, %v189_v60  ;;  %v210_v63 = vsel %vm79_vm1, %v200_v61, 0.0  ;;  %v216_v6 = vsel %vm79_vm1, %v202_v1, 0.0 }
 0x180   :  { %211 = vadd.xlane.f32.xlu0 %v210_v63  ;;  %v184_v2 = vpop.xlane.xlu1 %183 }
 0x181   :  { %v191_v3 = vmul.f32 0.03125, %v184_v2  ;;  %v201_v4 = vmul.f32 %v195_v62, %v195_v62 }
 0x183   :  { %v197_v5 = vsub.f32 %v812_v40, %v191_v3  ;;  %v213_v7 = vsel %vm79_vm1, %v201_v4, 0.0  ;;  %v654_v3 = vld [vmem:[%s930_s8] sm:$0xff]   ;;  %v656_v4 = vld [vmem:[%s930_s8 + $0x10] sm:$0xff]  }
 0x184   :  { %217 = vadd.xlane.f32.xlu0 %v216_v6  ;;  %214 = vadd.xlane.f32.xlu1 %v213_v7  ;;  %v558_v6 = vld [vmem:[%s931_s7] ss:$0 sm:$0xff] }
 0x185   :  { %v203_v8 = vmul.f32 %v197_v5, %v197_v5  ;;  %622 = vmatpush3.bf16.msra.mxu0 %v654_v3 }
 0x186   :  { %623 = vmatprep.subr.bf16.mxu0 %v682_v0 }
 0x187   :  { %v219_v9 = vsel %vm79_vm1, %v203_v8, 0.0 }
 0x188   :  { %220 = vadd.xlane.f32.xlu1 %v219_v9 }
 0x205   :  { %v206_v12 = vpop.xlane.xlu0 %205 }
 0x206   :  { %v222_v13 = vmul.f32 0.03125, %v206_v12 }
 0x208   :  { %v228_v14 = vadd.f32 1e-05, %v222_v13 }
 0x209   :  { %v209_v15 = vpop.xlane.xlu1 %208 }
 0x20a   :  { %658 = vrsqrt.f32 %v228_v14  ;;  %v223_v16 = vmul.f32 0.03125, %v209_v15 }
 0x20c   :  { %v229_v18 = vadd.f32 1e-05, %v223_v16 }
 0x20d   :  { %v212_v19 = vpop.xlane.xlu0 %211 }
 0x20e   :  { %660 = vrsqrt.f32 %v229_v18  ;;  %v224_v20 = vmul.f32 0.03125, %v212_v19 }
 0x210   :  { %v230_v21 = vadd.f32 1e-05, %v224_v20 }
 0x211   :  { %v218_v23 = vpop.xlane.xlu0 %217  ;;  %v215_v24 = vpop.xlane.xlu1 %214 }
 0x212   :  { %662 = vrsqrt.f32 %v230_v21  ;;  %v226_v26 = vmul.f32 0.03125, %v218_v23  ;;  %v225_v27 = vmul.f32 0.03125, %v215_v24 }
 0x214   :  { %v659_v28 = vpop.eup %658  ;;  %v231_v29 = vadd.f32 1e-05, %v225_v27  ;;  %v232_v31 = vadd.f32 1e-05, %v226_v26 }
 0x215   :  { %v240_v30 = vmul.f32 %v659_v28, %v192_v45  ;;  %v221_v32 = vpop.xlane.xlu1 %220 }
 0x216   :  { %v227_v35 = vmul.f32 0.03125, %v221_v32  ;;  %664 = vrsqrt.f32 %v231_v29 }
 0x217   :  { %v252_v39 = vmul.f32 %v556_v34, %v240_v30  ;;  %666 = vrsqrt.f32 %v232_v31 }
 0x218   :  { %v661_v36 = vpop.eup %660  ;;  %v233_v37 = vadd.f32 1e-05, %v227_v35 }
 0x219   :  { %v241_v41 = vmul.f32 %v661_v36, %v820_v49  ;;  %v264_v45 = vadd.f32 %v557_v42, %v252_v39 }
 0x21a   :  { %668 = vrsqrt.f32 %v233_v37 }
 0x21b   :  { %v253_v43 = vmul.f32 %v556_v34, %v241_v41 }
 0x21c   :  { %v663_v44 = vpop.eup %662 }
 0x21d   :  { %v265_v46 = vadd.f32 %v557_v42, %v253_v43  ;;  %v242_v47 = vmul.f32 %v663_v44, %v829_v57 }
 0x21f   :  { %v270_v48 = vpack.c.bf16 %v265_v46, %v264_v45  ;;  %v254_v49 = vmul.f32 %v556_v34, %v242_v47 }
 0x220   :  { %v665_v50 = vpop.eup %664 }
 0x221   :  { %610 = vmatmul.mubr.msk.bf16.vlgmr.msra.gmra.mrb[4].mxu1 %vm79_vm1, %v270_v48  ;;  %v243_v51 = vmul.f32 %v665_v50, %v195_v62  ;;  %v667_v52 = vpop.eup %666  ;;  %v266_v59 = vadd.f32 %v557_v42, %v254_v49 }
 0x222   :  { %613 = vmatprep.mubr.msk.bf16.mxu1 %vm683_vm0, %v682_v0  ;;  %v244_v58 = vmul.f32 %v667_v52, %v826_v56  ;;  %v655_v56 = vld [vmem:[%s930_s8 + $0x8] sm:$0xff]  }
 0x223   :  { %v255_v54 = vmul.f32 %v556_v34, %v243_v51  ;;  %624 = vmatpush3.bf16.msra.mxu0 %v655_v56 }
 0x224   :  { %v669_v53 = vpop.eup %668  ;;  %v256_v57 = vmul.f32 %v556_v34, %v244_v58  ;;  %625 = vmatprep.subr.bf16.mxu0 %v682_v0 }
 0x225   :  { %v245_v55 = vmul.f32 %v669_v53, %v197_v5  ;;  %v267_v60 = vadd.f32 %v557_v42, %v255_v54  ;;  %v657_v5 = vld [vmem:[%s930_s8 + $0x18] sm:$0xff]  }
 0x226   :  { %v268_v1 = vadd.f32 %v557_v42, %v256_v57 }
 0x227   :  { %v271_v61 = vpack.c.bf16 %v267_v60, %v266_v59  ;;  %v257_v63 = vmul.f32 %v556_v34, %v245_v55  ;;  %626 = vmatpush3.bf16.msra.mxu0 %v656_v4 }
 0x228   :  { %627 = vmatprep.subr.bf16.mxu0 %v682_v0 }
 0x229   :  { %614 = vmatmul.mubr.msk.bf16.gmra.mrb[8].mxu1 %vm79_vm1, %v271_v61  ;;  %v269_v62 = vadd.f32 %v557_v42, %v257_v63 }
 0x22a   :  { %617 = vmatprep.mubr.msk.bf16.mxu1 %vm683_vm0, %v682_v0 }
 0x22b   :  { %v272_v2 = vpack.c.bf16 %v269_v62, %v268_v1  ;;  %628 = vmatpush3.bf16.msra.mxu0 %v657_v5 }
 0x231   :  { %618 = vmatmul.mubr.msk.bf16.gmra.mrb[12].mxu1 %vm79_vm1, %v272_v2 }
 0x2f4   :  { %v339_v7 = vpop.f32.mrb[4].mxu1 }
 0x2f5   :  { %v340_v8 = vadd.f32 %v558_v6, %v339_v7  ;;  %v611_v9 = vpop.f32.mrb[5].mxu1 }
 0x2f6   :  { %v342_v10 = vpop.f32.mrb[6].mxu1 }
 0x2f7   :  { %v362_v11 = vmul.f32 %v340_v8, %v340_v8  ;;  %v343_v12 = vadd.f32 %v558_v6, %v342_v10  ;;  %v612_v13 = vpop.f32.mrb[7].mxu1 }
 0x2f9   :  { %v368_v14 = vmul.f32 %v362_v11, %v340_v8  ;;  %v363_v15 = vmul.f32 %v343_v12, %v343_v12 }
 0x2fb   :  { %v374_v16 = vmul.f32 0.044715, %v368_v14  ;;  %v369_v18 = vmul.f32 %v363_v15, %v343_v12 }
 0x2fc   :  { %v347_v21 = vpop.f32.mrb[8].mxu1 }
 0x2fd   :  { %v380_v19 = vadd.f32 %v374_v16, %v340_v8  ;;  %v375_v20 = vmul.f32 0.044715, %v369_v18  ;;  %v348_v23 = vadd.f32 %v558_v6, %v347_v21  ;;  %v615_v24 = vpop.f32.mrb[9].mxu1 }
 0x2fe   :  { %v350_v28 = vpop.f32.mrb[10].mxu1 }
 0x2ff   :  { %v386_v26 = vmul.f32 0.7978846, %v380_v19  ;;  %v381_v27 = vadd.f32 %v375_v20, %v343_v12  ;;  %v364_v29 = vmul.f32 %v348_v23, %v348_v23  ;;  %v351_v30 = vadd.f32 %v558_v6, %v350_v28  ;;  %v616_v31 = vpop.f32.mrb[11].mxu1 }
 0x301   :  { %670 = vtanh.f32 %v386_v26  ;;  %v387_v32 = vmul.f32 0.7978846, %v381_v27  ;;  %v370_v34 = vmul.f32 %v364_v29, %v348_v23  ;;  %v365_v35 = vmul.f32 %v351_v30, %v351_v30 }
 0x303   :  { %672 = vtanh.f32 %v387_v32  ;;  %v376_v36 = vmul.f32 0.044715, %v370_v34  ;;  %v371_v37 = vmul.f32 %v365_v35, %v351_v30 }
 0x304   :  { %v355_v39 = vpop.f32.mrb[12].mxu1 }
 0x305   :  { %v382_v41 = vadd.f32 %v376_v36, %v348_v23  ;;  %v377_v42 = vmul.f32 0.044715, %v371_v37  ;;  %v356_v43 = vadd.f32 %v558_v6, %v355_v39  ;;  %v619_v44 = vpop.f32.mrb[13].mxu1 }
 0x306   :  { %v358_v45 = vpop.f32.mrb[14].mxu1 }
 0x307   :  { %v388_v46 = vmul.f32 0.7978846, %v382_v41  ;;  %v383_v47 = vadd.f32 %v377_v42, %v351_v30  ;;  %v366_v48 = vmul.f32 %v356_v43, %v356_v43  ;;  %v359_v50 = vadd.f32 %v558_v6, %v358_v45  ;;  %v620_v51 = vpop.f32.mrb[15].mxu1 }
 0x309   :  { %674 = vtanh.f32 %v388_v46  ;;  %v389_v49 = vmul.f32 0.7978846, %v383_v47  ;;  %v372_v52 = vmul.f32 %v366_v48, %v356_v43  ;;  %v367_v53 = vmul.f32 %v359_v50, %v359_v50 }
 0x30b   :  { %v671_v54 = vpop.eup %670  ;;  %676 = vtanh.f32 %v389_v49  ;;  %v378_v58 = vmul.f32 0.044715, %v372_v52  ;;  %v373_v59 = vmul.f32 %v367_v53, %v359_v50 }
 0x30c   :  { %v398_v55 = vadd.f32 1.0, %v671_v54 }
 0x30d   :  { %v673_v60 = vpop.eup %672  ;;  %v384_v57 = vadd.f32 %v378_v58, %v356_v43  ;;  %v379_v62 = vmul.f32 0.044715, %v373_v59 }
 0x30e   :  { %v404_v61 = vmul.f32 0.5, %v398_v55  ;;  %v399_v63 = vadd.f32 1.0, %v673_v60 }
 0x30f   :  { %v390_v2 = vmul.f32 0.7978846, %v384_v57  ;;  %v385_v3 = vadd.f32 %v379_v62, %v359_v50 }
 0x310   :  { %v405_v1 = vmul.f32 0.5, %v399_v63  ;;  %v410_v56 = vmul.f32 %v404_v61, %v340_v8 }
 0x311   :  { %678 = vtanh.f32 %v390_v2  ;;  %v391_v5 = vmul.f32 0.7978846, %v385_v3 }
 0x312   :  { %v411_v4 = vmul.f32 %v405_v1, %v343_v12 }
 0x313   :  { %v675_v6 = vpop.eup %674  ;;  %680 = vtanh.f32 %v391_v5 }
 0x314   :  { %v416_v7 = vpack.c.bf16 %v411_v4, %v410_v56  ;;  %v400_v9 = vadd.f32 1.0, %v675_v6 }
 0x315   :  { %v677_v10 = vpop.eup %676 }
 0x316   :  { %630 = vmatmul.mubr.msk.bf16.vlgmr.msra.gmra.mrb[8].mxu0 %vm451_vm2, %v416_v7  ;;  %v406_v11 = vmul.f32 0.5, %v400_v9  ;;  %v401_v13 = vadd.f32 1.0, %v677_v10 }
 0x317   :  { %633 = vmatprep.mubr.msk.bf16.mxu0 %vm683_vm0, %v682_v0 }
 0x318   :  { %v407_v14 = vmul.f32 0.5, %v401_v13  ;;  %v412_v15 = vmul.f32 %v406_v11, %v348_v23  ;;  %v571_v23 = vld [vmem:[%s932_s9] ss:$0 sm:$0xff] }
 0x31a   :  { %v413_v16 = vmul.f32 %v407_v14, %v351_v30 }
 0x31b   :  { %v679_v8 = vpop.eup %678 }
 0x31c   :  { %v402_v12 = vadd.f32 1.0, %v679_v8  ;;  %v417_v18 = vpack.c.bf16 %v413_v16, %v412_v15 }
 0x31d   :  { %v681_v19 = vpop.eup %680 }
 0x31e   :  { %v408_v20 = vmul.f32 0.5, %v402_v12  ;;  %v403_v21 = vadd.f32 1.0, %v681_v19  ;;  %634 = vmatmul.mubr.msk.bf16.gmra.mrb[12].mxu0 %vm451_vm2, %v417_v18 }
 0x31f   :  { %637 = vmatprep.mubr.msk.bf16.mxu0 %vm683_vm0, %v682_v0 }
 0x320   :  { %v409_v24 = vmul.f32 0.5, %v403_v21  ;;  %v414_v26 = vmul.f32 %v408_v20, %v356_v43 }
 0x322   :  { %v415_v27 = vmul.f32 %v409_v24, %v359_v50 }
 0x324   :  { %v418_v28 = vpack.c.bf16 %v415_v27, %v414_v26 }
 0x326   :  { %638 = vmatmul.mubr.msk.bf16.gmra.mrb[16].mxu0 %vm451_vm2, %v418_v28 }
 0x3e9   :  { %v495_v29 = vpop.f32.mrb[8].mxu0 }
 0x3ea   :  { %v518_v30 = vadd.f32 %v495_v29, %v785_v17  ;;  %v631_v31 = vpop.f32.mrb[9].mxu0 }
 0x3eb   :  { %v498_v32 = vpop.f32.mrb[10].mxu0 }
 0x3ec   :  { %v531_v34 = vadd.f32 %v571_v23, %v518_v30  ;;  %v519_v35 = vadd.f32 %v498_v32, %v787_v22  ;;  %v632_v36 = vpop.f32.mrb[11].mxu0 }
 0x3ee   :  { %537 = vst.msk [vmem:[%s933_s10] sm:$0xff] %vm79_vm1, %v531_v34  ;;  %v532_v0 = vadd.f32 %v571_v23, %v519_v35 }
 0x3f0   :  { %538 = vst.msk [vmem:[%s933_s10 + $0x8] sm:$0xff] %vm79_vm1, %v532_v0 }
 0x3f1   :  { %v503_v37 = vpop.f32.mrb[12].mxu0 }
 0x3f2   :  { %v520_v17 = vadd.f32 %v503_v37, %v804_v33  ;;  %v635_v39 = vpop.f32.mrb[13].mxu0 }
 0x3f3   :  { %v506_v41 = vpop.f32.mrb[14].mxu0 }
 0x3f4   :  { %v533_v42 = vadd.f32 %v571_v23, %v520_v17  ;;  %v521_v22 = vadd.f32 %v506_v41, %v808_v38  ;;  %v636_v43 = vpop.f32.mrb[15].mxu0 }
 0x3f6   :  { %539 = vst.msk [vmem:[%s933_s10 + $0x10] sm:$0xff] %vm79_vm1, %v533_v42  ;;  %v534_v44 = vadd.f32 %v571_v23, %v521_v22 }
 0x3f8   :  { %540 = vst.msk [vmem:[%s933_s10 + $0x18] sm:$0xff] %vm79_vm1, %v534_v44 }
 0x3f9   :  { %v511_v45 = vpop.f32.mrb[16].mxu0 }
 0x3fa   :  { %v522_v33 = vadd.f32 %v511_v45, %v794_v25  ;;  %v639_v46 = vpop.f32.mrb[17].mxu0 }
 0x3fb   :  { %v514_v47 = vpop.f32.mrb[18].mxu0 }
 0x3fc   :  { %v535_v48 = vadd.f32 %v571_v23, %v522_v33  ;;  %v523_v38 = vadd.f32 %v514_v47, %v812_v40  ;;  %v640_v50 = vpop.f32.mrb[19].mxu0 }
 0x3fe   :  { %541 = vst.msk [vmem:[%s933_s10 + $0x20] sm:$0xff] %vm79_vm1, %v535_v48  ;;  %v536_v51 = vadd.f32 %v571_v23, %v523_v38 }
 0x400   :  { %542 = vst.msk [vmem:[%s933_s10 + $0x28] sm:$0xff] %vm79_vm1, %v536_v51 }

// kernel: vit_forward.10
= control target key start
LH: loop header
LB: loop body
LE: loop exit
PB: predicated region body
PF: predicated region fallthrough
CT: control target
= control target key end

     0   :  { %s799_s12 = smov 0   ;;  %s801_s13 = smov 0   ;;  %s870_s0 = inlined_call_operand.vmem [shape: bf16[2,4,24,8], index: 0, kind: input, shape index: {}]   ;;  %s871_s1 = inlined_call_operand.vmem [shape: bf16[2,4,24,8], index: 1, kind: input, shape index: {}]   ;;  %s872_s2 = inlined_call_operand.vmem [shape: bf16[2,4,24,8], index: 2, kind: input, shape index: {}]   ;;  %s873_s3 = inlined_call_operand.vmem [shape: bf16[2,4,24,8], index: 3, kind: output, shape index: {}]  }
   0x1   :  { %s803_s14 = smov 0   ;;  %s805_s15 = smov 0  }
   0x2   :  { %s807_s16 = smov 0  }
   0x3 LB: > { %s22_s17 = sadd.s32 1, %s769_s14  ;;  %s25_s18 = sadd.s32 1, %s773_s15  ;;  %s777_s16 = sphi %s807_s16, %s13_s16   ;;  %s773_s15 = sphi %s805_s15, %s877_s15   ;;  %s769_s14 = sphi %s803_s14, %s876_s14   ;;  %s765_s13 = sphi %s801_s13, %s875_s13   ;;  %s761_s12 = sphi %s799_s12, %s874_s12  }
   0x4   : > { %p23_p0 = scmp.ge.s32.totalorder %s22_s17, 4  ;;  %p629_p1 = scmp.ge.s32.totalorder %s777_s16, 1 }
   0x5   : > { %p189_p2 = scmp.lt.s32.totalorder %s777_s16, 9 }
   0x6   : > { %s879_s17 = smov (%p23_p0, %s22_s17), 0  ;;  %s881_s18 = smov (!%p23_p0, %s25_s18), %s773_s15 }
   0x7   : > { %p190_p3 = pnand %p629_p1, %p189_p2  ;;  %p27_p4 = scmp.ge.s32.totalorder %s881_s18, 2 }
   0x8   : > { %p239_p5 = scmp.lt.s32.totalorder (!%p190_p3), %s765_s13, 1  ;;  %p241_p6 = scmp.lt.s32.totalorder (!%p190_p3), %s761_s12, 3  ;;  %vm301_vm0 = vcmask (!%p190_p3), 64512   ;;  %v362_v6 = vlaneseq (!%p190_p3)  ;;  %vm368_vm2 = vcmask (!%p190_p3), 195584   ;;  %vm419_vm3 = vcmask (!%p190_p3), 1043456  }
   0x9   : > { %s883_s18 = smov (%p27_p4, %s881_s18), 0  ;;  %193 = sbr.rel (%p190_p3) target bundleno = 794 (0x31a), region = 32 }
   0xa   : > { %v363_v7 = vand.u32 (!%p190_p3), 127, %v362_v6  ;;  %vm484_vm4 = vcmask (!%p190_p3), 60416  }
   0xc   : > { %vm364_vm1 = vcmp.lt.s32.totalorder (!%p190_p3), %v363_v7, 17 }
  0x10   : > { %s885_s13 = smov (!%p239_p5, %s765_s13), 1  ;;  %s887_s12 = smov (!%p241_p6, %s761_s12), 3 }
  0x11   : > { %s680_s19 = smul.u32 12, %s885_s13 }
  0x12   : > { %s679_s20 = smul.u32 3, %s887_s12 }
  0x14   : > { %s245_s21 = sadd.s32 %s680_s19, %s679_s20 }
  0x15   : > { %s829_s22 = sshll.u32 %s245_s21, 2 }
  0x16   : > { %s256_s25 = scalar_lea.vmem %s871_s1, %s829_s22  ;;  %s247_s28 = scalar_lea.vmem %s870_s0, %s829_s22 }
  0x17   : > { %v721_v0 = vld [vmem:[%s256_s25] sm:$0xff]   ;;  %v722_v1 = vld [vmem:[%s256_s25 + $0x8] ss:$0 sps:$4 sm:$0xff]   ;;  %s265_s4 = scalar_lea.vmem %s872_s2, %s829_s22  ;;  %s274_s7 = scalar_lea.vmem %s873_s3, %s829_s22 }
  0x18   : > { %v723_v2 = vld [vmem:[%s247_s28] sm:$0xff]   ;;  %676 = vmatprep.subr.msk.bf16.mxu0 %vm301_vm0, %v721_v0  ;;  %v309_v3 = vsel %vm301_vm0, %v721_v0, 0  ;;  %v312_v4 = vsel %vm301_vm0, %v722_v1, 0  ;;  %v724_v5 = vld [vmem:[%s247_s28 + $0x8] ss:$0 sps:$4 sm:$0xff]  }
  0x19   : > { %661 = vmatpush3.bf16.xpose.msra.mxu0 %v309_v3  ;;  %664 = vmatprep.mubr.msk.bf16.mxu0 %vm301_vm0, %v723_v2  ;;  %v725_v33 = vld [vmem:[%s265_s4] sm:$0xff]   ;;  %v726_v34 = vld [vmem:[%s265_s4 + $0x8] ss:$0 sps:$4 sm:$0xff]  }
  0x1a   : > { %677 = vmatprep.subr.msk.bf16.mxu0 %vm301_vm0, %v722_v1  ;;  %668 = vmatprep.subr.bf16.mxu1 %v725_v33  ;;  %v421_v35 = vsel %vm419_vm3, %v726_v34, 0 }
  0x1b   : > { %669 = vmatpush3.bf16.msra.mxu1 %v725_v33 }
  0x1c   : > { %678 = vmatprep.subr.msk.bf16.mxu1 %vm419_vm3, %v726_v34 }
  0x1f   : > { %671 = vmatpush3.bf16.msra.mxu1 %v421_v35 }
  0x21   : > { %663 = vmatpush3.bf16.xpose.msra.mxu0 %v312_v4 }
  0x28   : > { %665 = vmatmul.mubr.msk.bf16.vlgmr.msra.gmra.mrb[0].mxu0 %vm301_vm0, %v724_v5 }
  0xfb   : > { %v666_v8 = vpop.f32.mrb[0].mxu0 }
  0xfc   : > { %v367_v9 = vsel %vm364_vm1, %v666_v8, -1e+30  ;;  %v348_v10 = vpop.f32.mrb[1].mxu0 }
  0xfd   : > { %v365_v11 = vsel %vm364_vm1, %v348_v10, -1e+30  ;;  %v667_v12 = vpop.f32.mrb[2].mxu0  ;;  %v375_v13 = vsel %vm368_vm2, %v367_v9, -inf }
  0xfe   : > { %376 = vmax.xlane.f32.xlu1 %v375_v13  ;;  %v351_v14 = vpop.f32.mrb[3].mxu0  ;;  %v369_v15 = vsel %vm368_vm2, %v365_v11, -inf }
  0xff   : > { %v366_v16 = vsel %vm364_vm1, %v351_v14, -1e+30  ;;  %370 = vmax.xlane.f32.xlu0 %v369_v15 }
 0x100   : > { %v372_v17 = vsel %vm368_vm2, %v366_v16, -inf }
 0x103   : > { %373 = vmax.xlane.f32.xlu0 %v372_v17 }
 0x18b   : > { %v377_v18 = vpop.xlane.xlu1 %376 }
 0x18c   : > { %v380_v19 = vsub.f32 %v367_v9, %v377_v18  ;;  %v371_v20 = vpop.xlane.xlu0 %370 }
 0x18d   : > { %v378_v21 = vsub.f32 %v365_v11, %v371_v20 }
 0x18e   : > { %v385_v22 = vmul.f32 1.442695, %v380_v19 }
 0x18f   : > { %v381_v23 = vmul.f32 1.442695, %v378_v21 }
 0x190   : > { %v374_v24 = vpop.xlane.xlu0 %373 }
 0x191   : > { %727 = vpow2.f32 %v381_v23  ;;  %v379_v25 = vsub.f32 %v366_v16, %v374_v24 }
 0x192   : > { %729 = vpow2.f32 %v385_v22 }
 0x193   : > { %v383_v26 = vmul.f32 1.442695, %v379_v25 }
 0x195   : > { %731 = vpow2.f32 %v383_v26 }
 0x19b   : > { %v728_v27 = vpop.eup %727 }
 0x19c   : > { %v387_v28 = vsel %vm368_vm2, %v728_v27, 0.0  ;;  %v730_v29 = vpop.eup %729 }
 0x19d   : > { %388 = vadd.xlane.f32.xlu1 %v387_v28  ;;  %v393_v31 = vsel %vm368_vm2, %v730_v29, 0.0 }
 0x19f   : > { %v732_v30 = vpop.eup %731 }
 0x1a0   : > { %v390_v32 = vsel %vm368_vm2, %v732_v30, 0.0 }
 0x1a1   : > { %394 = vadd.xlane.f32.xlu1 %v393_v31  ;;  %391 = vadd.xlane.f32.xlu0 %v390_v32 }
 0x22a   : > { %v389_v36 = vpop.xlane.xlu1 %388 }
 0x22b   : > { %733 = vrcp.f32 %v389_v36 }
 0x22e   : > { %v395_v37 = vpop.xlane.xlu1 %394  ;;  %v392_v38 = vpop.xlane.xlu0 %391 }
 0x22f   : > { %735 = vrcp.f32 %v395_v37 }
 0x230   : > { %737 = vrcp.f32 %v392_v38 }
 0x235   : > { %v734_v39 = vpop.eup %733 }
 0x236   : > { %v399_v43 = vmul.f32 %v734_v39, %v728_v27 }
 0x239   : > { %v736_v40 = vpop.eup %735 }
 0x23a   : > { %v738_v41 = vpop.eup %737  ;;  %v401_v42 = vmul.f32 %v736_v40, %v730_v29 }
 0x23b   : > { %v400_v44 = vmul.f32 %v738_v41, %v732_v30 }
 0x23c   : > { %v403_v45 = vpack.c.bf16 %v401_v42, %v401_v42 }
 0x23d   : > { %v402_v46 = vpack.c.bf16 %v400_v44, %v399_v43 }
 0x23f   : > { %672 = vmatprep.mubr.msk.bf16.mxu1 %vm368_vm2, %v402_v46 }
 0x240   : > { %673 = vmatmul.mubr.msk.bf16.vlgmr.msra.gmra.mrb[0].mxu1 %vm368_vm2, %v403_v45 }
 0x313   : > { %v674_v47 = vpop.f32.mrb[0].mxu1 }
 0x314   : > { %v651_v48 = vpack.c.bf16 %v674_v47, %v674_v47  ;;  %v457_v49 = vpop.f32.mrb[1].mxu1 }
 0x315   : > { %v649_v50 = vpack.c.bf16 %v457_v49, %v457_v49  ;;  %v675_v51 = vpop.f32.mrb[2].mxu1 }
 0x316   : > { %487 = vst.msk [vmem:[%s274_s7 + $0x8] sm:$0xf] %vm484_vm4, %v651_v48  ;;  %v460_v52 = vpop.f32.mrb[3].mxu1 }
 0x317   : > { %485 = vst.msk [vmem:[%s274_s7] sm:$0xf] %vm484_vm4, %v649_v50  ;;  %v650_v53 = vpack.c.bf16 %v460_v52, %v460_v52 }
 0x319   : > { %486 = vst.msk [vmem:[%s274_s7 + $0x4] sm:$0xf] %vm484_vm4, %v650_v53 }
 0x31a PF: > { %s13_s16 = sadd.s32 1, %s777_s16   ;;  %s874_s12 = smov %s769_s14 }
 0x31b   : > { %p10_p7 = scmp.ge.s32.totalorder %s13_s16, 10   ;;  %s875_s13 = smov %s773_s15 }
 0x31c   : > { %s876_s14 = smov %s879_s17  ;;  %s877_s15 = smov %s883_s18 }
 0x31d   :  { %12 = sbr.rel (!%p10_p7) target bundleno = 3 (0x3), region = 68 }

// kernel: vit_forward.15
= control target key start
LH: loop header
LB: loop body
LE: loop exit
PB: predicated region body
PF: predicated region fallthrough
CT: control target
= control target key end

     0   :  { %vm25_vm0 = vcmask 254976   ;;  %s249_s0 = inlined_call_operand.vmem [shape: f32[2,32], index: 0, kind: input, shape index: {}]   ;;  %s250_s1 = inlined_call_operand.vmem [shape: f32[1,32], index: 1, kind: input, shape index: {}]   ;;  %s251_s2 = inlined_call_operand.vmem [shape: f32[1,32], index: 2, kind: input, shape index: {}]   ;;  %s252_s3 = inlined_call_operand.vmem [shape: bf16[32,10], index: 3, kind: input, shape index: {}]   ;;  %s253_s4 = inlined_call_operand.vmem [shape: f32[1,10], index: 4, kind: input, shape index: {}]   ;;  %s254_s5 = inlined_call_operand.hbm [shape: f32[2,10], index: 5, kind: output, shape index: {}]  }
   0x1   :  { %v22_v0 = vld [vmem:[%s249_s0] sm:$0x3] }
   0x2   :  { %v26_v1 = vsel %vm25_vm0, %v22_v0, 0.0 }
   0x3   :  { %27 = vadd.xlane.f32.xlu0 %v26_v1 }
   0x4   :  { %10 = vsyncpa [#allocation3], 0  ;;  %v158_v7 = vld [vmem:[%s252_s3] sm:$0xff]   ;;  %v186_v8 = vmov 0.0   ;;  %v159_v9 = vld [vmem:[%s252_s3 + $0x8] sm:$0xff]   ;;  %vm187_vm1 = vmmov 0  }
   0x5   :  { %147 = vmatprep.subr.bf16.mxu0 %v186_v8  ;;  %151 = vmatprep.mubr.msk.bf16.mxu0 %vm187_vm1, %v186_v8  ;;  %v138_v14 = vld [vmem:[%s250_s1] ss:$0 sm:$0xff]  ;;  %vm78_vm2 = vcmask 261120   ;;  %s188_s28 = smov [#allocation2]   ;;  %vm122_vm3 = vcmask 74752  }
   0x6   :  { %148 = vmatpush3.bf16.msra.mxu0 %v158_v7  ;;  %v139_v16 = vld [vmem:[%s251_s2] ss:$0 sm:$0xff]  ;;  %s130_s29 = sshll.u32 %s188_s28, 4  ;;  %s131_s29 = int_to_ptr.vmem [resolvable:$true] %s130_s29 }
   0x7   :  { %149 = vmatprep.subr.bf16.mxu0 %v186_v8  ;;  %v140_v20 = vld [vmem:[%s253_s4] ss:$0 sm:$0xff]  ;;  %s162_s1 = scalar_lea.vmem %s131_s29, 32  ;;  %p167_p1 = scmp.lt.s32.totalorder %s131_s29, %s131_s29 }
   0x8   :  { %p163_p0 = scmp.ne.s32.totalorder %s131_s29, %s162_s1  ;;  %p168_p2 = scmp.lt.s32.totalorder %s162_s1, %s162_s1 }
   0xa   :  { %150 = vmatpush3.bf16.msra.mxu0 %v159_v9  ;;  %p169_p3 = por %p168_p2, %p167_p1 }
   0xc   :  { %p170_p4 = pnand %p169_p3, %p163_p0 }
  0x90   :  { %v28_v2 = vpop.xlane.xlu0 %27 }
  0x91   :  { %v30_v3 = vmul.f32 0.03125, %v28_v2 }
  0x93   :  { %v31_v4 = vsub.f32 %v22_v0, %v30_v3 }
  0x95   :  { %v32_v5 = vmul.f32 %v31_v4, %v31_v4 }
  0x97   :  { %v33_v6 = vsel %vm25_vm0, %v32_v5, 0.0 }
  0x98   :  { %34 = vadd.xlane.f32.xlu0 %v33_v6 }
 0x125   :  { %v35_v10 = vpop.xlane.xlu0 %34 }
 0x126   :  { %v36_v11 = vmul.f32 0.03125, %v35_v10 }
 0x128   :  { %v37_v12 = vadd.f32 1e-05, %v36_v11 }
 0x12a   :  { %160 = vrsqrt.f32 %v37_v12 }
 0x134   :  { %v161_v13 = vpop.eup %160 }
 0x135   :  { %v39_v15 = vmul.f32 %v161_v13, %v31_v4 }
 0x137   :  { %v46_v17 = vmul.f32 %v138_v14, %v39_v15 }
 0x139   :  { %v53_v18 = vadd.f32 %v139_v16, %v46_v17 }
 0x13b   :  { %v54_v19 = vpack.c.bf16 %v53_v18, %v53_v18 }
 0x13d   :  { %152 = vmatmul.mubr.msk.bf16.vlgmr.msra.gmra.mrb[0].mxu0 %vm78_vm2, %v54_v19 }
 0x210   :  { %v116_v21 = vpop.f32.mrb[0].mxu0 }
 0x211   :  { %v117_v22 = vadd.f32 %v140_v20, %v116_v21  ;;  %v153_v23 = vpop.f32.mrb[1].mxu0 }
 0x212   :  { %v119_v24 = vpop.f32.mrb[2].mxu0 }
 0x213   :  { %v154_v25 = vpop.f32.mrb[3].mxu0  ;;  %123 = vst.msk [vmem:[#allocation2] sm:$0x3] %vm122_vm3, %v117_v22 }
 0x214   :  { %173 = shalt.err (!%p170_p4)
}
 0x215   :  { %s174_s4 = scalar_lea.hbm %s254_s5, 32 }
 0x216   :  { %p175_p5 = scmp.ne.s32.totalorder %s254_s5, %s174_s4  ;;  %p178_p6 = scmp.lt.u32.totalorder %s174_s4, %s254_s5 }
 0x218   :  { %p180_p7 = pnand %p178_p6, %p175_p5 }
 0x21a   :  { %183 = shalt.err (!%p180_p7)
}
 0x21b   :  { %133 = dma.vmem_to_hbm [thread:$0]  %s131_s29, 32, %s254_s5, [#allocation3]  }
 0x21c   :  { %184 = dma.done.wait [#allocation3], 32  }
 0x21d   :  { %185 = vsyncadd [#allocation3], 4294967264 }
 0x21e   :  { %137 = vsyncpa [#allocation3], 1 }

</bundles_post_ra>
